<compile_context>
chip_gen: v6e
topology: v6e:2x2x1
jax: 0.10.0
libtpu: 0.0.40
codegen_flags: <defaults>
</compile_context>

<pallas_src>
import functools

import jax
import jax.numpy as jnp
from jax import lax
from jax.experimental import pallas as pl
from jax.experimental.pallas import tpu as pltpu


def _round_up(v, m):
    return (v + m - 1) // m * m


def _projection_kernel(x_ref, w_ref, o_ref, *, compute_dtype):
    """One (tm, N) output slab: x_tile (tm, K) @ W_kn (K, N), f32 accumulate."""
    x = x_ref[...]
    if compute_dtype is not None:
        # In-kernel cast of the activation tile (no extra HBM traffic).
        x = x.astype(compute_dtype)
        precision = None
    else:
        precision = lax.Precision.HIGHEST  # full-precision f32 MXU passes
    o_ref[...] = jnp.dot(
        x,
        w_ref[...],
        preferred_element_type=jnp.float32,
        precision=precision,
    ).astype(o_ref.dtype)


def visual_projection(x, weight, *, tm=512, mxu_dtype=None, out_dtype=None):
    """
    x:      (batch, len, d_in)
    weight: (d_out, d_in)   -- PyTorch nn.Linear convention (no bias)
    returns (batch, len, d_out) = x @ weight.T

    tm:        requested row tile (rounded to a multiple of 8, clamped so the
               grid has >= 2 steps whenever possible).
    mxu_dtype: optional MXU operand dtype (e.g. jnp.bfloat16 on v5e/v6e/v7x);
               accumulation stays f32.
    out_dtype: optional output dtype (default: x.dtype).
    """
    b, l, d_in = x.shape
    d_out, d_in_w = weight.shape
    assert d_in_w == d_in, "weight must be (d_out, d_in)"

    out_dtype = x.dtype if out_dtype is None else jnp.dtype(out_dtype)
    M, K, N = b * l, d_in, d_out

    # One-time weight prep outside the kernel: transpose to (K, N) so the
    # contraction dim lands on the RHS sublane axis, and (optionally) cast.
    w_kn = weight.T
    if mxu_dtype is not None:
        w_kn = w_kn.astype(mxu_dtype)

    # Row tile: sublane-aligned; ensure >= 2 grid steps when M allows so both
    # v7x TensorCores get work even at batch=1.
    tm = _round_up(max(8, int(tm)), 8)
    tm = min(tm, max(8, _round_up(pl.cdiv(M, 2), 8)))
    grid_m = pl.cdiv(M, tm)  # ragged last block; Pallas masks its store

    x2 = x.reshape(M, K)

    # VMEM plan: 2x x-tile + 2x out-tile (double-buffered) + 1x resident weight.
    x_tile_bytes = tm * K * x2.dtype.itemsize
    o_tile_bytes = tm * N * out_dtype.itemsize
    w_bytes = K * N * w_kn.dtype.itemsize
    vmem_limit = int(2 * x_tile_bytes + 2 * o_tile_bytes + w_bytes) + (4 << 20)
    vmem_limit = min(max(vmem_limit, 16 << 20), 64 << 20)

    cost = pl.CostEstimate(
        flops=2 * M * K * N,
        transcendentals=0,
        bytes_accessed=(
            x2.size * x2.dtype.itemsize
            + w_kn.size * w_kn.dtype.itemsize
            + M * N * out_dtype.itemsize
        ),
    )

    kernel = functools.partial(_projection_kernel, compute_dtype=mxu_dtype)

    out = pl.pallas_call(
        kernel,
        out_shape=jax.ShapeDtypeStruct((M, N), out_dtype),
        grid_spec=pltpu.PrefetchScalarGridSpec(
            num_scalar_prefetch=0,
            grid=(grid_m,),
            in_specs=[
                # x row slab (tm, K): ragged last block is fine (row-indep matmul).
                pl.BlockSpec((K and (tm, K))[0:2] if False else (tm, K),
                             lambda i: (i, 0)),
                # Weight resident in VMEM, constant block index -> single buffer.
                pl.BlockSpec((K, N), lambda i: (0, 0),
                             pipeline_mode=pl.Buffered(1)),
            ],
            out_specs=pl.BlockSpec((tm, N), lambda i: (i, 0)),  # lane-dense
        ),
        compiler_params=pltpu.CompilerParams(
            dimension_semantics=("parallel",),
            vmem_limit_bytes=vmem_limit,
        ),
        cost_estimate=cost,
    )(x2, w_kn)

    return out.reshape(b, l, N)


if __name__ == "__main__":
    # Small synthetic shapes consistent with the forward: (batch, len, d_in).
    # seq=7 -> M=14 is NOT tile-divisible, so the ragged-last-block path is
    # exercised (mirrors real CLIP ViT-L/14 seq_len=257). d_in != d_out to
    # catch any transposition mistakes.
    batch, seq, d_in, d_out = 2, 7, 384, 256

    key = jax.random.PRNGKey(0)
    kx, kw = jax.random.split(key)

    x = jax.random.normal(kx, (batch, seq, d_in), dtype=jnp.float32)
    weight = jax.random.normal(kw, (d_out, d_in), dtype=jnp.float32) * (d_in ** -0.5)

    y_ref = jnp.einsum("bld,od->blo", x, weight)

    # f32 path: requested tm=512 clamps to 8 -> grid of 2 with a ragged last
    # block (6 valid rows); verifies masked stores don't leak garbage.
    y = jax.block_until_ready(visual_projection(x, weight))
    assert y.shape == (batch, seq, d_out)
    assert jnp.allclose(y, y_ref, atol=1e-4, rtol=1e-4), "f32 path mismatch"

    # bf16 MXU operands (cast in-kernel), f32 accumulation, bf16 output.
    # Looser tolerance is an explicit operand-precision decision, not a bug.
    y_bf16 = jax.block_until_ready(
        visual_projection(x, weight, mxu_dtype=jnp.bfloat16, out_dtype=jnp.bfloat16)
    )
    assert y_bf16.dtype == jnp.bfloat16
    assert jnp.allclose(y_bf16.astype(jnp.float32), y_ref, atol=1e-1, rtol=1e-1), \
        "bf16 path mismatch"

    print("KERNEL_OK")
</pallas_src>

<mosaic_0001>
module attributes {stable_mosaic.version = 11 : i64} {
  func.func @_projection_kernel(%arg0: i32, %arg1: memref<8x384xf32, #tpu.memory_space<vmem>>, %arg2: memref<384x256xf32, #tpu.memory_space<vmem>>, %arg3: memref<8x256xf32, #tpu.memory_space<vmem>>) attributes {dimension_semantics = [#tpu.dimension_semantics<parallel>], iteration_bounds = array<i64: 2>, scalar_prefetch = 0 : i64, scratch_operands = 0 : i64, tpu.core_type = #tpu.core_type<tc>, window_params = [{transform_indices = @transform_0, window_bounds = array<i64: 8, 384>}, {pipeline_mode = #tpu.pipeline_mode<synchronous>, transform_indices = @transform_1, window_bounds = array<i64: 384, 256>}, {transform_indices = @transform_2, window_bounds = array<i64: 8, 256>}]} {
    %c0 = arith.constant 0 : index
    %c0_0 = arith.constant 0 : index
    %0 = vector.load %arg1[%c0, %c0_0] : memref<8x384xf32, #tpu.memory_space<vmem>>, vector<8x384xf32>
    %c0_1 = arith.constant 0 : index
    %c0_2 = arith.constant 0 : index
    %1 = vector.load %arg2[%c0_1, %c0_2] : memref<384x256xf32, #tpu.memory_space<vmem>>, vector<384x256xf32>
    %cst = arith.constant dense<0.000000e+00> : vector<8x256xf32>
    %2 = tpu.matmul %0, %1, %cst {dimension_numbers = #tpu.dot_dimension_numbers<[1], [0], [0], [1], [0, 0, 1, 1], [], []>, precision = #tpu.contract_precision<fp32>} : vector<8x384xf32>, vector<384x256xf32>, vector<8x256xf32> -> vector<8x256xf32>
    %c0_3 = arith.constant 0 : index
    %c0_4 = arith.constant 0 : index
    %3 = vector.load %arg3[%c0_3, %c0_4] : memref<8x256xf32, #tpu.memory_space<vmem>>, vector<8x256xf32>
    tpu.vector_store %arg3[%c0_3, %c0_4], %2 {strides = array<i32>} : memref<8x256xf32, #tpu.memory_space<vmem>>, vector<8x256xf32>,
    return
  }
  func.func @transform_0(%arg0: i32) -> (i32, i32) {
    %c0_i32 = arith.constant 0 : i32
    %c0_i32_0 = arith.constant 0 : i32
    return %arg0, %c0_i32 : i32, i32
  }
  func.func @transform_1(%arg0: i32) -> (i32, i32) {
    %c0_i32 = arith.constant 0 : i32
    %c0_i32_0 = arith.constant 0 : i32
    %c0_i32_1 = arith.constant 0 : i32
    return %c0_i32, %c0_i32_0 : i32, i32
  }
  func.func @transform_2(%arg0: i32) -> (i32, i32) {
    %c0_i32 = arith.constant 0 : i32
    %c0_i32_0 = arith.constant 0 : i32
    return %arg0, %c0_i32 : i32, i32
  }
}

</mosaic_0001>

<bundles_post_ra>
// kernel: tpu_custom_call.1
= control target key start
LH: loop header
LB: loop body
LE: loop exit
PB: predicated region body
PF: predicated region fallthrough
CT: control target
= control target key end

     0   :  { %7 = vsyncpa [#allocation3], 0  ;;  %s4651_s0 = inlined_call_operand.hbm [shape: f32[14,384], index: 0, kind: input, shape index: {}]   ;;  %s4652_s1 = inlined_call_operand.hbm [shape: f32[384,256], index: 1, kind: input, shape index: {}]   ;;  %s4653_s2 = inlined_call_operand.hbm [shape: f32[14,256], index: 2, kind: output, shape index: {}]  }
   0x1   :  { %9 = vsyncpa [#allocation3 + $0x1], 0 }
   0x2   :  { %10 = vsyncpa [#allocation6], 0 }
   0x3   :  { %11 = vsyncpa [#allocation4], 0 }
   0x4   :  { %13 = vsyncpa [#allocation4 + $0x1], 0  ;;  %s2732_s9 = smov 0   ;;  %s2734_s10 = smov 0  }
   0x5   :  { %s2736_s11 = smov 0   ;;  %s2738_s12 = smov 0  }
   0x6 LB: > { %s2753_s13 = sadd.s32 4294967295, %s2709_s12   ;;  %s2510_s14 = sadd.s32 4294967294, %s2709_s12   ;;  %s2709_s12 = sphi %s2738_s12, %s5400_s12   ;;  %s2705_s11 = sphi %s2736_s11, %s5399_s11   ;;  %s2701_s10 = sphi %s2734_s10, %s5398_s10   ;;  %s2697_s9 = sphi %s2732_s9, %s5397_s9  }
   0x7   : > { %p39_p0 = scmp.ne.s32.totalorder %s2701_s10, %s2697_s9  ;;  %p4654_p1 = scmp.eq.s32.totalorder %s2753_s13, 0 }
   0x8   : > { %p90_p3 = scmp.eq.s32.totalorder %s2510_s14, 1  ;;  %p2511_p5 = scmp.ge.s32.totalorder %s2709_s12, 1 }
   0x9   : > { %p2762_p4 = por %p4654_p1, %p39_p0  ;;  %p97_p7 = scmp.lt.s32.totalorder %s2709_s12, 3 }
   0xa   : > { %p2767_p6 = por %p90_p3, %p39_p0  ;;  %s2711_s18 = smov [#allocation5]  }
   0xb   : > { %s4935_s15 = scalar_select %p2762_p4, 1, 0 }
   0xc   : > { %s4936_s16 = scalar_select %p2767_p6, 1, 0 }
   0xd   : > { %p2772_p8 = pnand %p2511_p5, %p97_p7  ;;  %s109_s19 = sshll.u32 %s2711_s18, 4  ;;  %s110_s19 = int_to_ptr.vmem [resolvable:$true] %s109_s19 }
   0xe   : > { %s2786_s21 = sadd.s32 1, %s2709_s12   ;;  %s26_s22 = sadd.s32 1, %s2705_s11 }
   0xf   : > { %s4937_s17 = scalar_select %p2772_p8, 1, 0 }
  0x10   : > { %p2535_p9 = pneg %p2772_p8  ;;  %s23_s23 = ssub.s32 %s2709_s12, %s2786_s21 }
  0x11   : > { %s2598_s24 = scalar_lea.vmem %s110_s19, 12288  ;;  %p2606_p5 = scmp.lt.s32.totalorder %s110_s19, %s110_s19 }
  0x12   : > { %p2781_p11 = pnand %p2535_p9, %p4654_p1  ;;  %p2599_p13 = scmp.ne.s32.totalorder %s110_s19, %s2598_s24 }
  0x13   : > { %p2607_p7 = scmp.lt.s32.totalorder %s2598_s24, %s2598_s24 }
  0x14   : > { %p2589_p12 = pneg %p2781_p11 }
  0x15   : > { %p2608_p10 = por %p2607_p7, %p2606_p5 }
  0x16   : > { %p2601_p0 = pnand %p2599_p13, %p2589_p12 }
  0x18   : > { %p2602_p3 = pneg %p2601_p0 }
  0x1a   : > { %p2609_p2 = pnand %p2608_p10, %p2602_p3 }
  0x1c   : > { %2612 = shalt.err (!%p2609_p2)
}
  0x1d   : > { %s2712_s25 = smov 256   ;;  %s2713_s26 = smov 16  }
  0x1e   : > { %2538 = dma.hbm_to_vmem [thread:$0]  (!%p2781_p11), %s4652_s1, 12288, %s110_s19, [#allocation6], %s2712_s25, %s2712_s25, %s2713_s26  }
  0x1f   : > { %p24_p9 = scmp.eq.s32.totalorder %s23_s23, 0  ;;  %p33_p12 = scmp.ne.s32.totalorder %s2705_s11, %s2701_s10 }
  0x20   : > { %p34_p10 = scmp.eq.s32.totalorder %s2709_s12, 0  ;;  %p2548_p2 = scmp.lt.s32.totalorder %s2709_s12, 2 }
  0x21   : > { %s2803_s29 = scalar_select %p24_p9, %s2705_s11, %s26_s22  }
  0x22   : > { %p35_p13 = por %p34_p10, %p33_p12  ;;  %p4939_p0 = scmp.eq.s32.totalorder %s2753_s13, 1 }
  0x23   : > { %s123_s3 = sand.u32 1, %s2705_s11   ;;  %s2525_s4 = smul.u32 384, %s2709_s12 }
  0x24   : > { %p2807_p3 = por %p4939_p0, %p33_p12  ;;  %s2524_s5 = smul.u32 24, %s123_s3 }
  0x25   : > { %p2813_p5 = pnand %p2548_p2, %p35_p13  ;;  %s2820_s14 = scalar_lea.hbm %s4651_s0, %s2525_s4 }
  0x26   : > { %s4940_s30 = scalar_select %p2807_p3, 1, 0 }
  0x27   : > { %s127_s18 = scalar_lea.vmem [#allocation2], %s2524_s5  ;;  %s124_s20 = scalar_lea.sflag [#allocation3], %s123_s3 }
  0x28   : > { %s135_s19 = sshll.u32 %s127_s18, 4  ;;  %s2613_s22 = scalar_lea.hbm %s2820_s14, 384  ;;  %s136_s19 = int_to_ptr.vmem [resolvable:$true] %s135_s19 }
  0x29   : > { %p2614_p11 = scmp.ne.s32.totalorder %s2820_s14, %s2613_s22  ;;  %p2615_p7 = pneg %p2813_p5 }
  0x2a   : > { %s2618_s25 = scalar_lea.hbm %s4651_s0, 768  ;;  %p2619_p10 = scmp.lt.s32.totalorder %s2820_s14, %s4651_s0 }
  0x2b   : > { %p2616_p9 = pnand %p2615_p7, %p2614_p11  ;;  %p2620_p2 = scmp.lt.s32.totalorder %s2618_s25, %s2613_s22 }
  0x2d   : > { %p2617_p12 = pneg %p2616_p9  ;;  %p2621_p13 = por %p2620_p2, %p2619_p10 }
  0x2f   : > { %p2622_p0 = pnand %p2621_p13, %p2617_p12 }
  0x31   : > { %2625 = shalt.err (!%p2622_p0)
}
  0x32   : > { %s2626_s28 = scalar_lea.vmem %s136_s19, 384  ;;  %s2714_s3 = smov [#allocation2]  }
  0x33   : > { %p2627_p1 = scmp.ne.s32.totalorder %s136_s19, %s2626_s28  ;;  %s2631_s4 = sshll.u32 %s2714_s3, 4  ;;  %s2632_s4 = int_to_ptr.vmem [resolvable:$false] %s2631_s4 }
  0x34   : > { %s2633_s5 = scalar_lea.vmem %s2632_s4, 768  ;;  %p2634_p11 = scmp.lt.s32.totalorder %s136_s19, %s2632_s4 }
  0x35   : > { %p2629_p6 = pnand %p2627_p1, %p2615_p7  ;;  %p2635_p9 = scmp.lt.s32.totalorder %s2633_s5, %s2626_s28 }
  0x37   : > { %p2630_p3 = pneg %p2629_p6  ;;  %p2636_p4 = por %p2635_p9, %p2634_p11 }
  0x39   : > { %p2637_p8 = pnand %p2636_p4, %p2630_p3 }
  0x3b   : > { %2640 = shalt.err (!%p2637_p8)
}
  0x3c   : > { %2542 = dma.hbm_to_vmem [thread:$0]  (!%p2813_p5), %s2820_s14, 384, %s136_s19, %s124_s20  }
  0x3d   : > { %p4942_p12 = scmp.ne.s32.totalorder %s4937_s17, 0 }
  0x3f   : > { %144 = sbr.rel (%p4942_p12) target bundleno = 615 (0x267), region = 28 }
  0x44   : > { %s2839_s7 = sand.u32 1, %s2701_s10   ;;  %p4943_p1 = scmp.ne.s32.totalorder %s4935_s15, 0 }
  0x45   : > { %s2526_s8 = smul.u32 24, %s2839_s7  ;;  %s147_s18 = scalar_lea.sflag [#allocation3], %s2839_s7 }
  0x47   : > { %s2843_s22 = scalar_lea.vmem [#allocation2], %s2526_s8 }
  0x48   : > { %2684 = dma.done.wait (%p4943_p1), %s147_s18, 384  }
  0x49   : > { %2686 = vsyncadd (%p4943_p1), %s147_s18, 4294966912  ;;  %p4944_p4 = scmp.eq.s32.totalorder %s2753_s13, 0 }
  0x4b   : > { %2688 = dma.done.wait (%p4944_p4), [#allocation6], 12288   ;;  %p4945_p6 = pmov %p4944_p4 }
  0x4c   : > { %v209_v0 = vld [vmem:[#allocation5 + $0xf8] sm:$0xff]  ;;  %v208_v1 = vld [vmem:[#allocation5 + $0xf0] sm:$0xff]  ;;  %v207_v2 = vld [vmem:[#allocation5 + $0xe8] sm:$0xff]  ;;  %s2517_s15 = sshll.u32 %s2839_s7, 4  ;;  %s2523_s17 = sshll.u32 %s2753_s13, 8 }
  0x4d   : > { %2690 = vsyncadd (%p4945_p6), [#allocation6], 4294955008  ;;  %v2853_v3 = vand.u32 4294901760, %v209_v0  ;;  %v2855_v4 = vand.u32 4294901760, %v208_v1  ;;  %v2857_v5 = vand.u32 4294901760, %v207_v2  ;;  %v206_v6 = vld [vmem:[#allocation5 + $0xe0] sm:$0xff]  ;;  %s2428_s23 = scalar_lea.hbm %s4653_s2, %s2523_s17 }
  0x4e   : > { %v205_v7 = vld [vmem:[#allocation5 + $0xd8] sm:$0xff]  ;;  %v204_v8 = vld [vmem:[#allocation5 + $0xd0] sm:$0xff]  ;;  %v2859_v9 = vand.u32 4294901760, %v206_v6  ;;  %v203_v12 = vld [vmem:[#allocation5 + $0xc8] sm:$0xff]  ;;  %s174_s6 = scalar_lea.vmem [#allocation7], %s2517_s15  ;;  %s2416_s24 = scalar_lea.sflag [#allocation4], %s2839_s7 }
  0x4f   : > { %v2861_v10 = vand.u32 4294901760, %v205_v7  ;;  %v2863_v11 = vand.u32 4294901760, %v204_v8  ;;  %v202_v13 = vld [vmem:[#allocation5 + $0xc0] sm:$0xff]  ;;  %v201_v14 = vld [vmem:[#allocation5 + $0xb8] sm:$0xff]  ;;  %275 = vmatprep.subr.mxu0 %v2853_v3  ;;  %v2866_v15 = vand.u32 4294901760, %v203_v12  ;;  %v2873_v18 = vsub.f32 %v209_v0, %v2853_v3  ;;  %v2875_v19 = vld [vmem:[#allocation5 + $0xb0] sm:$0xff] }
  0x50   : > { %v2868_v16 = vand.u32 4294901760, %v202_v13  ;;  %v2870_v17 = vand.u32 4294901760, %v201_v14  ;;  %v2877_v20 = vld [vmem:[#allocation5 + $0xa8] sm:$0xff]  ;;  %v2879_v21 = vld [vmem:[#allocation5 + $0xa0] sm:$0xff]  ;;  %277 = vmatpush1.msra.mxu0 %v2855_v4  ;;  %v2883_v22 = vand.u32 4294901760, %v2875_v19  ;;  %v2886_v23 = vsub.f32 %v208_v1, %v2855_v4  ;;  %v2894_v26 = vld [vmem:[#allocation5 + $0x98] sm:$0xff] }
  0x51   : > { %v2889_v24 = vand.u32 4294901760, %v2877_v20  ;;  %v2892_v25 = vsub.f32 %v207_v2, %v2857_v5  ;;  %v2896_v27 = vld [vmem:[#allocation5 + $0x90] sm:$0xff]  ;;  %v2898_v28 = vld [vmem:[#allocation5 + $0x88] sm:$0xff]  ;;  %279 = vmatprep.subr.mxu0 %v2857_v5  ;;  %v4671_v29 = vand.u32 4294901760, %v2873_v18  ;;  %v2903_v30 = vand.u32 4294901760, %v2879_v21  ;;  %v2920_v37 = vld [vmem:[#allocation5 + $0x80] sm:$0xff] }
  0x52   : > { %v2906_v31 = vsub.f32 %v206_v6, %v2859_v9  ;;  %v2909_v32 = vand.u32 4294901760, %v2894_v26  ;;  %281 = vmatpush1.msra.mxu0 %v2859_v9  ;;  %v4669_v33 = vand.u32 4294901760, %v2886_v23  ;;  %v2915_v35 = vsub.f32 %v205_v7, %v2861_v10  ;;  %v2944_v46 = vld [vmem:[#allocation5 + $0x78] sm:$0xff]  ;;  %v2954_v51 = vld [vmem:[#allocation5 + $0x70] sm:$0xff]  ;;  %v2961_v56 = vld [vmem:[#allocation5 + $0x68] sm:$0xff]  ;;  %s2430_s14 = sshll.u32 %s174_s6, 4  ;;  %s2431_s14 = int_to_ptr.vmem [resolvable:$true] %s2430_s14 }
  0x53   : > { %4946 = vst [vmem:[#allocation11_spill] sm:$0xff] %v2889_v24  ;;  %4947 = vst [vmem:[#allocation12_spill] sm:$0xff] %v2903_v30  ;;  %v4668_v34 = vand.u32 4294901760, %v2892_v25  ;;  %v2918_v36 = vand.u32 4294901760, %v2896_v27  ;;  %283 = vmatprep.subr.mxu0 %v2861_v10  ;;  %v422_v38 = vsub.f32 %v2873_v18, %v4671_v29  ;;  %v2928_v40 = vsub.f32 %v204_v8, %v2863_v11  ;;  %v2973_v61 = vld [vmem:[#allocation5 + $0x60] sm:$0xff]  ;;  %v2985_v2 = vld [vmem:[#allocation5 + $0x58] sm:$0xff] }
  0x54   : > { %4948 = vst [vmem:[#allocation13_spill] sm:$0xff] %v2909_v32  ;;  %v4666_v39 = vand.u32 4294901760, %v2906_v31  ;;  %v2931_v41 = vand.u32 4294901760, %v2898_v28  ;;  %285 = vmatpush1.msra.mxu0 %v2863_v11  ;;  %v428_v42 = vsub.f32 %v2886_v23, %v4669_v33  ;;  %v4664_v44 = vand.u32 4294901760, %v2915_v35  ;;  %s2641_s25 = scalar_lea.vmem %s2431_s14, 256  ;;  %p5394_p3 = scmp.ne.s32.totalorder %s4940_s30, 0 }
  0x55   : > { %4949 = vst [vmem:[#allocation14_spill] sm:$0xff] %v2918_v36  ;;  %v434_v43 = vsub.f32 %v2892_v25, %v4668_v34  ;;  %v2942_v45 = vsub.f32 %v203_v12, %v2866_v15  ;;  %287 = vmatprep.subr.mxu0 %v2866_v15  ;;  %v423_v47 = vand.u32 4294901760, %v422_v38  ;;  %v4663_v49 = vand.u32 4294901760, %v2928_v40  ;;  %v3086_v34 = vld [vmem:[#allocation5 + $0x20] sm:$0xff]  ;;  %p2642_p8 = scmp.ne.s32.totalorder %s2431_s14, %s2641_s25  ;;  %s2716_s13 = smov [#allocation7]  }
  0x56   : > { %4950 = vst [vmem:[#allocation15_spill] sm:$0xff] %v2931_v41  ;;  %v440_v48 = vsub.f32 %v2906_v31, %v4666_v39  ;;  %v2952_v50 = vand.u32 4294901760, %v2920_v37  ;;  %289 = vmatpush1.msra.mxu0 %v2868_v16  ;;  %v429_v52 = vand.u32 4294901760, %v428_v42  ;;  %v446_v54 = vsub.f32 %v2915_v35, %v4664_v44  ;;  %v3076_v39 = vld [vmem:[#allocation5 + $0x28] sm:$0xff]  ;;  %s2645_s26 = sshll.u32 %s2716_s13, 4  ;;  %s2646_s26 = int_to_ptr.vmem [resolvable:$false] %s2645_s26 }
  0x57   : > { %v435_v53 = vand.u32 4294901760, %v434_v43  ;;  %v4661_v55 = vand.u32 4294901760, %v2942_v45  ;;  %291 = vmatprep.subr.mxu0 %v2870_v17  ;;  %424 = vmatprep.subr.mxu1 %v423_v47  ;;  %v452_v58 = vsub.f32 %v2928_v40, %v4663_v49  ;;  %v2968_v59 = vsub.f32 %v202_v13, %v2868_v16  ;;  %v2996_v13 = vld [vmem:[#allocation5 + $0x50] sm:$0xff]  ;;  %p2643_p5 = pnand %p2642_p8, %p5394_p3  ;;  %s2647_s27 = scalar_lea.vmem %s2646_s26, 512 }
  0x58   : > { %4951 = vst [vmem:[#allocation16_spill] sm:$0xff] %v2952_v50  ;;  %v441_v57 = vand.u32 4294901760, %v440_v48  ;;  %v2971_v60 = vand.u32 4294901760, %v2944_v46  ;;  %293 = vmatpush1.msra.mxu0 %v2883_v22  ;;  %430 = vmatpush1.msra.mxu1 %v429_v52  ;;  %v447_v62 = vand.u32 4294901760, %v446_v54  ;;  %v2980_v0 = vsub.f32 %v201_v14, %v2870_v17  ;;  %v3063_v49 = vld [vmem:[#allocation5 + $0x30] sm:$0xff]  ;;  %p2648_p10 = scmp.lt.s32.totalorder %s2431_s14, %s2646_s26  ;;  %p2649_p2 = scmp.lt.s32.totalorder %s2647_s27, %s2641_s25 }
  0x59   : > { %v458_v63 = vsub.f32 %v2942_v45, %v4661_v55  ;;  %v2983_v1 = vand.u32 4294901760, %v2954_v51  ;;  %295 = vmatprep.subr.mxu0 %v2889_v24  ;;  %436 = vmatprep.subr.mxu1 %v435_v53  ;;  %v453_v6 = vand.u32 4294901760, %v452_v58  ;;  %v4659_v7 = vand.u32 4294901760, %v2968_v59  ;;  %p2644_p7 = pneg %p2643_p5 }
  0x5a   : > { %4952 = vst [vmem:[#allocation17_spill] sm:$0xff] %v2971_v60  ;;  %v2991_v8 = vsub.f32 %v2875_v19, %v2883_v22  ;;  %v2994_v12 = vand.u32 4294901760, %v2961_v56  ;;  %297 = vmatpush1.msra.mxu0 %v2903_v30  ;;  %442 = vmatpush1.msra.mxu1 %v441_v57  ;;  %v4658_v38 = vand.u32 4294901760, %v2980_v0  ;;  %v3002_v42 = vsub.f32 %v2877_v20, %v2889_v24  ;;  %v3019_v20 = vld [vmem:[#allocation5 + $0x48] sm:$0xff]  ;;  %p2650_p13 = por %p2649_p2, %p2648_p10 }
  0x5b   : > { %4953 = vst [vmem:[#allocation18_spill] sm:$0xff] %v2983_v1  ;;  %v459_v14 = vand.u32 4294901760, %v458_v63  ;;  %v3005_v43 = vand.u32 4294901760, %v2973_v61  ;;  %299 = vmatprep.subr.mxu0 %v2909_v32  ;;  %448 = vmatprep.subr.mxu1 %v447_v62  ;;  %v464_v19 = vsub.f32 %v2968_v59, %v4659_v7  ;;  %v3014_v48 = vsub.f32 %v2879_v21, %v2903_v30 }
  0x5c   : > { %4954 = vst [vmem:[#allocation19_spill] sm:$0xff] %v2994_v12  ;;  %v4660_v47 = vand.u32 4294901760, %v2991_v8  ;;  %v3017_v52 = vand.u32 4294901760, %v2985_v2  ;;  %301 = vmatpush1.msra.mxu0 %v2918_v36  ;;  %454 = vmatpush1.msra.mxu1 %v453_v6  ;;  %v470_v53 = vsub.f32 %v2980_v0, %v4658_v38  ;;  %v4662_v54 = vand.u32 4294901760, %v3002_v42  ;;  %v3042_v38 = vld [vmem:[#allocation5 + $0x40] sm:$0xff]  ;;  %p2651_p0 = pnand %p2650_p13, %p2644_p7 }
  0x5d   : > { %4955 = vst [vmem:[#allocation20_spill] sm:$0xff] %v3005_v43  ;;  %v3028_v57 = vsub.f32 %v2894_v26, %v2909_v32  ;;  %v3031_v21 = vand.u32 4294901760, %v2996_v13  ;;  %303 = vmatprep.subr.mxu0 %v2931_v41  ;;  %460 = vmatprep.subr.mxu1 %v459_v14  ;;  %v465_v58 = vand.u32 4294901760, %v464_v19  ;;  %v4665_v63 = vand.u32 4294901760, %v3014_v48 }
  0x5e   : > { %4956 = vst [vmem:[#allocation21_spill] sm:$0xff] %v3017_v52  ;;  %v476_v62 = vsub.f32 %v2991_v8, %v4660_v47  ;;  %v3040_v6 = vsub.f32 %v2896_v27, %v2918_v36  ;;  %305 = vmatpush1.msra.mxu0 %v2952_v50  ;;  %v471_v26 = vand.u32 4294901760, %v470_v53  ;;  %v482_v14 = vsub.f32 %v3002_v42, %v4662_v54  ;;  %v3052_v47 = vld [vmem:[#allocation5 + $0x38] sm:$0xff] }
  0x5f   : > { %4957 = vst [vmem:[#allocation22_spill] sm:$0xff] %v3031_v21  ;;  %v4667_v19 = vand.u32 4294901760, %v3028_v57  ;;  %v3050_v7 = vand.u32 4294901760, %v3019_v20  ;;  %466 = vmatpush1.msra.mxu1 %v465_v58  ;;  %307 = vmatprep.subr.mxu0 %v2971_v60  ;;  %v488_v55 = vsub.f32 %v3014_v48, %v4665_v63  ;;  %v3061_v54 = vsub.f32 %v2898_v28, %v2931_v41  ;;  %v3166_v36 = vld [vmem:[#allocation5 + $0x1f8] sm:$0xff] }
  0x60   : > { %v477_v27 = vand.u32 4294901760, %v476_v62  ;;  %v4670_v53 = vand.u32 4294901760, %v3040_v6  ;;  %472 = vmatprep.subr.mxu1 %v471_v26  ;;  %309 = vmatpush1.msra.mxu0 %v2983_v1  ;;  %v483_v44 = vand.u32 4294901760, %v482_v14  ;;  %v3070_v62 = vand.u32 4294901760, %v3042_v38 }
  0x61   : > { %4958 = vst [vmem:[#allocation23_spill] sm:$0xff] %v3050_v7  ;;  %v494_v58 = vsub.f32 %v3028_v57, %v4667_v19  ;;  %v3074_v63 = vsub.f32 %v2920_v37, %v2952_v50  ;;  %311 = vmatprep.subr.mxu0 %v2994_v12  ;;  %v489_v28 = vand.u32 4294901760, %v488_v55  ;;  %v4674_v14 = vand.u32 4294901760, %v3061_v54 }
  0x62   : > { %4959 = vst [vmem:[#allocation24_spill] sm:$0xff] %v3070_v62  ;;  %478 = vmatpush1.msra.mxu1 %v477_v27  ;;  %v500_v26 = vsub.f32 %v3040_v6, %v4670_v53  ;;  %v3084_v19 = vand.u32 4294901760, %v3052_v47  ;;  %313 = vmatpush1.msra.mxu0 %v3005_v43  ;;  %v3092_v55 = vsub.f32 %v2944_v46, %v2971_v60  ;;  %v3095_v33 = vand.u32 4294901760, %v3063_v49  ;;  %v3097_v53 = vld [vmem:[#allocation5 + $0x18] sm:$0xff] }
  0x63   : > { %484 = vmatprep.subr.mxu1 %v483_v44  ;;  %v495_v37 = vand.u32 4294901760, %v494_v58  ;;  %v4677_v27 = vand.u32 4294901760, %v3074_v63  ;;  %315 = vmatprep.subr.mxu0 %v3017_v52  ;;  %v506_v44 = vsub.f32 %v3061_v54, %v4674_v14  ;;  %v3105_v58 = vsub.f32 %v2954_v51, %v2983_v1  ;;  %v3122_v51 = vld [vmem:[#allocation5 + $0x10] sm:$0xff] }
  0x64   : > { %4960 = vst [vmem:[#allocation25_spill] sm:$0xff] %v3084_v19  ;;  %4961 = vst [vmem:[#allocation26_spill] sm:$0xff] %v3095_v33  ;;  %490 = vmatpush1.msra.mxu1 %v489_v28  ;;  %v501_v29 = vand.u32 4294901760, %v500_v26  ;;  %v3108_v46 = vand.u32 4294901760, %v3076_v39  ;;  %317 = vmatpush1.msra.mxu0 %v3031_v21  ;;  %v3117_v60 = vsub.f32 %v2961_v56, %v2994_v12  ;;  %v3120_v14 = vand.u32 4294901760, %v3086_v34  ;;  %v3133_v56 = vld [vmem:[#allocation5 + $0x8] sm:$0xff] }
  0x65   : > { %496 = vmatprep.subr.mxu1 %v495_v37  ;;  %v512_v28 = vsub.f32 %v3074_v63, %v4677_v27  ;;  %319 = vmatprep.subr.mxu0 %v3050_v7  ;;  %v507_v37 = vand.u32 4294901760, %v506_v44  ;;  %v3128_v27 = vsub.f32 %v2973_v61, %v3005_v43  ;;  %v3131_v26 = vand.u32 4294901760, %v3097_v53  ;;  %v3156_v44 = vld [vmem:[#allocation5] sm:$0xff] }
  0x66   : > { %4962 = vst [vmem:[#allocation27_spill] sm:$0xff] %v3108_v46  ;;  %4963 = vst [vmem:[#allocation28_spill] sm:$0xff] %v3120_v14  ;;  %502 = vmatpush1.msra.mxu1 %v501_v29  ;;  %321 = vmatpush1.msra.mxu0 %v3070_v62  ;;  %v4966_v50 = vand.u32 4294901760, %v3092_v55  ;;  %v3142_v1 = vsub.f32 %v2985_v2, %v3017_v52  ;;  %v4968_v61 = vand.u32 4294901760, %v3105_v58  ;;  %v3164_v41 = vand.u32 4294901760, %v3133_v56 }
  0x67   : > { %4964 = vst [vmem:[#allocation29_spill] sm:$0xff] %v3128_v27  ;;  %4965 = vst [vmem:[#allocation30_spill] sm:$0xff] %v3131_v26  ;;  %v513_v12 = vand.u32 4294901760, %v512_v28  ;;  %508 = vmatprep.subr.mxu1 %v507_v37  ;;  %323 = vmatprep.subr.mxu0 %v3084_v19  ;;  %v3150_v28 = vand.u32 4294901760, %v3122_v51  ;;  %v4971_v37 = vand.u32 4294901760, %v3117_v60  ;;  %v3184_v24 = vand.u32 4294901760, %v3156_v44 }
  0x68   : > { %v518_v29 = vsub.f32 %v3092_v55, %v4966_v50  ;;  %4967 = vst [vmem:[#allocation31_spill] sm:$0xff] %v3142_v1  ;;  %v524_v43 = vsub.f32 %v3105_v58, %v4968_v61  ;;  %v3154_v50 = vsub.f32 %v2996_v13, %v3031_v21  ;;  %325 = vmatpush1.msra.mxu0 %v3095_v33  ;;  %4972 = vst [vmem:[#allocation34_spill] sm:$0xff] %v3164_v41 }
  0x69   : > { %4969 = vst [vmem:[#allocation32_spill] sm:$0xff] %v3150_v28  ;;  %514 = vmatpush1.msra.mxu1 %v513_v12  ;;  %v530_v52 = vsub.f32 %v3117_v60, %v4971_v37  ;;  %327 = vmatprep.subr.mxu0 %v3108_v46  ;;  %v4973_v13 = vand.u32 4294901760, %v3128_v27  ;;  %v3175_v21 = vsub.f32 %v3019_v20, %v3050_v7  ;;  %v3177_v37 = vld [vmem:[#allocation5 + $0x1f0] sm:$0xff]  ;;  %4976 = vst [vmem:[#allocation36_spill] sm:$0xff] %v3184_v24 }
  0x6a   : > { %4970 = vst [vmem:[#allocation33_spill] sm:$0xff] %v3154_v50  ;;  %v519_v2 = vand.u32 4294901760, %v518_v29  ;;  %v525_v32 = vand.u32 4294901760, %v524_v43  ;;  %329 = vmatpush1.msra.mxu0 %v3120_v14  ;;  %v4975_v43 = vand.u32 4294901760, %v3142_v1  ;;  %v3190_v29 = vld [vmem:[#allocation5 + $0x1e8] sm:$0xff] }
  0x6b   : > { %v536_v12 = vsub.f32 %v3128_v27, %v4973_v13  ;;  %4974 = vst [vmem:[#allocation35_spill] sm:$0xff] %v3175_v21  ;;  %v531_v61 = vand.u32 4294901760, %v530_v52  ;;  %v3188_v13 = vsub.f32 %v3042_v38, %v3070_v62  ;;  %331 = vmatprep.subr.mxu0 %v3131_v26  ;;  %v4978_v52 = vand.u32 4294901760, %v3154_v50 }
  0x6c   : > { %520 = vmatprep.subr.mxu1 %v519_v2  ;;  %v542_v30 = vsub.f32 %v3142_v1, %v4975_v43  ;;  %v3198_v43 = vand.u32 4294901760, %v3166_v36  ;;  %v3200_v1 = vld [vmem:[#allocation5 + $0x1e0] sm:$0xff]  ;;  %333 = vmatpush1.msra.mxu0 %v3150_v28  ;;  %v3209_v62 = vand.u32 4294901760, %v3177_v37 }
  0x6d   : > { %4977 = vst [vmem:[#allocation37_spill] sm:$0xff] %v3188_v13  ;;  %526 = vmatpush1.msra.mxu1 %v525_v32  ;;  %v537_v20 = vand.u32 4294901760, %v536_v12  ;;  %v548_v2 = vsub.f32 %v3154_v50, %v4978_v52  ;;  %v3206_v12 = vsub.f32 %v3052_v47, %v3084_v19  ;;  %v3211_v52 = vld [vmem:[#allocation5 + $0x1d8] sm:$0xff]  ;;  %335 = vmatprep.subr.mxu0 %v3164_v41  ;;  %v3222_v47 = vand.u32 4294901760, %v3190_v29 }
  0x6e   : > { %4979 = vst [vmem:[#allocation38_spill] sm:$0xff] %v3198_v43  ;;  %532 = vmatprep.subr.mxu1 %v531_v61  ;;  %v543_v38 = vand.u32 4294901760, %v542_v30  ;;  %4981 = vst [vmem:[#allocation40_spill] sm:$0xff] %v3209_v62  ;;  %v4982_v61 = vand.u32 4294901760, %v3175_v21  ;;  %v3219_v32 = vsub.f32 %v3063_v49, %v3095_v33  ;;  %337 = vmatpush1.msra.mxu0 %v3184_v24  ;;  %v4985_v19 = vand.u32 4294901760, %v3188_v13  ;;  %v3236_v49 = vld [vmem:[#allocation5 + $0x1d0] sm:$0xff] }
  0x6f   : > { %4980 = vst [vmem:[#allocation39_spill] sm:$0xff] %v3206_v12  ;;  %538 = vmatpush1.msra.mxu1 %v537_v20  ;;  %v549_v7 = vand.u32 4294901760, %v548_v2  ;;  %4984 = vst [vmem:[#allocation42_spill] sm:$0xff] %v3222_v47  ;;  %v3231_v50 = vsub.f32 %v3076_v39, %v3108_v46  ;;  %339 = vmatprep.subr.mxu0 %v3198_v43  ;;  %v3245_v2 = vand.u32 4294901760, %v3211_v52  ;;  %v3247_v39 = vld [vmem:[#allocation5 + $0x1c8] sm:$0xff] }
  0x70   : > { %v554_v30 = vsub.f32 %v3175_v21, %v4982_v61  ;;  %4983 = vst [vmem:[#allocation41_spill] sm:$0xff] %v3219_v32  ;;  %544 = vmatprep.subr.mxu1 %v543_v38  ;;  %v560_v20 = vsub.f32 %v3188_v13, %v4985_v19  ;;  %v3234_v61 = vand.u32 4294901760, %v3200_v1  ;;  %v4720_v38 = vand.u32 4294901760, %v3219_v32  ;;  %341 = vmatpush2.msra.mxu0 %v3209_v62 }
  0x71   : > { %4986 = vst [vmem:[#allocation43_spill] sm:$0xff] %v3231_v50  ;;  %550 = vmatpush1.msra.mxu1 %v549_v7  ;;  %v3242_v19 = vsub.f32 %v3086_v34, %v3120_v14  ;;  %4989 = vst [vmem:[#allocation46_spill] sm:$0xff] %v3245_v2  ;;  %v4990_v13 = vand.u32 4294901760, %v3206_v12  ;;  %343 = vmatprep.subr.mxu0 %v3222_v47  ;;  %v3264_v14 = vand.u32 4294901760, %v3236_v49  ;;  %v3270_v7 = vld [vmem:[#allocation5 + $0x1c0] sm:$0xff] }
  0x72   : > { %4987 = vst [vmem:[#allocation44_spill] sm:$0xff] %v3234_v61  ;;  %v555_v33 = vand.u32 4294901760, %v554_v30  ;;  %v561_v46 = vand.u32 4294901760, %v560_v20  ;;  %v3256_v30 = vsub.f32 %v3097_v53, %v3131_v26  ;;  %v572_v34 = vsub.f32 %v3219_v32, %v4720_v38  ;;  %345 = vmatpush2.msra.mxu0 %v3234_v61  ;;  %v3280_v32 = vld [vmem:[#allocation5 + $0x1b8] sm:$0xff] }
  0x73   : > { %4988 = vst [vmem:[#allocation45_spill] sm:$0xff] %v3242_v19  ;;  %v566_v21 = vsub.f32 %v3206_v12, %v4990_v13  ;;  %4992 = vst [vmem:[#allocation48_spill] sm:$0xff] %v3264_v14  ;;  %v3268_v13 = vsub.f32 %v3122_v51, %v3150_v28  ;;  %v3278_v20 = vand.u32 4294901760, %v3247_v39  ;;  %v4996_v51 = vand.u32 4294901760, %v3242_v19  ;;  %347 = vmatprep.subr.mxu0 %v3245_v2 }
  0x74   : > { %4991 = vst [vmem:[#allocation47_spill] sm:$0xff] %v3256_v30  ;;  %556 = vmatprep.subr.mxu1 %v555_v33  ;;  %v4994_v33 = vand.u32 4294901760, %v3231_v50  ;;  %v573_v12 = vand.u32 4294901760, %v572_v34  ;;  %349 = vmatpush2.msra.mxu0 %v3264_v14 }
  0x75   : > { %4993 = vst [vmem:[#allocation49_spill] sm:$0xff] %v3268_v13  ;;  %562 = vmatpush1.msra.mxu1 %v561_v46  ;;  %v567_v53 = vand.u32 4294901760, %v566_v21  ;;  %4995 = vst [vmem:[#allocation50_spill] sm:$0xff] %v3278_v20  ;;  %v584_v28 = vsub.f32 %v3242_v19, %v4996_v51  ;;  %v3289_v46 = vsub.f32 %v3133_v56, %v3164_v41  ;;  %v3298_v51 = vand.u32 4294901760, %v3270_v7  ;;  %v3304_v19 = vld [vmem:[#allocation5 + $0x1a8] sm:$0xff] }
  0x76   : > { %v578_v26 = vsub.f32 %v3231_v50, %v4994_v33  ;;  %v3291_v33 = vld [vmem:[#allocation5 + $0x1b0] sm:$0xff]  ;;  %v4998_v50 = vand.u32 4294901760, %v3256_v30  ;;  %v3302_v21 = vsub.f32 %v3156_v44, %v3184_v24  ;;  %351 = vmatprep.subr.mxu0 %v3278_v20  ;;  %v3312_v41 = vand.u32 4294901760, %v3280_v32  ;;  %v3325_v24 = vld [vmem:[#allocation5 + $0x198] sm:$0xff] }
  0x77   : > { %4997 = vst [vmem:[#allocation51_spill] sm:$0xff] %v3289_v46  ;;  %568 = vmatprep.subr.mxu1 %v567_v53  ;;  %4999 = vst [vmem:[#allocation52_spill] sm:$0xff] %v3298_v51  ;;  %v585_v56 = vand.u32 4294901760, %v584_v28  ;;  %v5001_v53 = vand.u32 4294901760, %v3268_v13  ;;  %353 = vmatpush2.msra.mxu0 %v3298_v51  ;;  %v3320_v28 = vsub.f32 %v3166_v36, %v3198_v43  ;;  %v3336_v36 = vand.u32 4294901760, %v3304_v19 }
  0x78   : > { %v579_v38 = vand.u32 4294901760, %v578_v26  ;;  %v590_v34 = vsub.f32 %v3256_v30, %v4998_v50  ;;  %5000 = vst [vmem:[#allocation53_spill] sm:$0xff] %v3302_v21  ;;  %574 = vmatpush1.msra.mxu1 %v573_v12  ;;  %5002 = vst [vmem:[#allocation54_spill] sm:$0xff] %v3312_v41  ;;  %v3314_v30 = vld [vmem:[#allocation5 + $0x1a0] sm:$0xff]  ;;  %v4743_v12 = vand.u32 4294901760, %v3302_v21  ;;  %355 = vmatprep.subr.mxu0 %v3312_v41 }
  0x79   : > { %v596_v26 = vsub.f32 %v3268_v13, %v5001_v53  ;;  %5003 = vst [vmem:[#allocation55_spill] sm:$0xff] %v3320_v28  ;;  %v3323_v53 = vand.u32 4294901760, %v3291_v33  ;;  %v5005_v13 = vand.u32 4294901760, %v3289_v46  ;;  %5007 = vst [vmem:[#allocation58_spill] sm:$0xff] %v3336_v36 }
  0x7a   : > { %580 = vmatprep.subr.mxu1 %v579_v38  ;;  %v591_v44 = vand.u32 4294901760, %v590_v34  ;;  %v3333_v34 = vsub.f32 %v3177_v37, %v3209_v62  ;;  %v608_v43 = vsub.f32 %v3302_v21, %v4743_v12  ;;  %v3350_v37 = vld [vmem:[#allocation5 + $0x190] sm:$0xff]  ;;  %v3356_v12 = vsub.f32 %v3200_v1, %v3234_v61 }
  0x7b   : > { %5004 = vst [vmem:[#allocation56_spill] sm:$0xff] %v3323_v53  ;;  %586 = vmatpush1.msra.mxu1 %v585_v56  ;;  %v597_v50 = vand.u32 4294901760, %v596_v26  ;;  %v602_v38 = vsub.f32 %v3289_v46, %v5005_v13  ;;  %357 = vmatpush2.msra.mxu0 %v3323_v53  ;;  %v3345_v13 = vsub.f32 %v3190_v29, %v3222_v47  ;;  %v3348_v26 = vand.u32 4294901760, %v3314_v30  ;;  %v3361_v29 = vld [vmem:[#allocation5 + $0x188] sm:$0xff] }
  0x7c   : > { %5006 = vst [vmem:[#allocation57_spill] sm:$0xff] %v3333_v34  ;;  %592 = vmatprep.subr.mxu1 %v591_v44  ;;  %v4754_v44 = vand.u32 4294901760, %v3333_v34  ;;  %359 = vmatprep.subr.mxu0 %v3336_v36  ;;  %5010 = vst [vmem:[#allocation61_spill] sm:$0xff] %v3356_v12  ;;  %v3359_v56 = vand.u32 4294901760, %v3325_v24  ;;  %v609_v47 = vand.u32 4294901760, %v608_v43  ;;  %v5012_v21 = vand.u32 4294901760, %v3320_v28 }
  0x7d   : > { %5008 = vst [vmem:[#allocation59_spill] sm:$0xff] %v3345_v13  ;;  %5009 = vst [vmem:[#allocation60_spill] sm:$0xff] %v3348_v26  ;;  %598 = vmatpush1.msra.mxu1 %v597_v50  ;;  %v603_v62 = vand.u32 4294901760, %v602_v38  ;;  %361 = vmatpush2.msra.mxu0 %v3348_v26  ;;  %v3370_v38 = vsub.f32 %v3211_v52, %v3245_v2  ;;  %v3378_v43 = vand.u32 4294901760, %v3350_v37  ;;  %v3384_v50 = vld [vmem:[#allocation5 + $0x180] sm:$0xff]  ;;  %v3391_v61 = vand.u32 4294901760, %v3361_v29 }
  0x7e   : > { %5011 = vst [vmem:[#allocation62_spill] sm:$0xff] %v3359_v56  ;;  %v614_v46 = vsub.f32 %v3320_v28, %v5012_v21  ;;  %v620_v1 = vsub.f32 %v3333_v34, %v4754_v44  ;;  %363 = vmatprep.subr.mxu0 %v3359_v56  ;;  %v3382_v21 = vsub.f32 %v3236_v49, %v3264_v14  ;;  %v3393_v34 = vld [vmem:[#allocation5 + $0x178] sm:$0xff]  ;;  %v5018_v27 = vand.u32 4294901760, %v3356_v12 }
  0x7f   : > { %5013 = vst [vmem:[#allocation63_spill] sm:$0xff] %v3370_v38  ;;  %604 = vmatprep.subr.mxu1 %v603_v62  ;;  %5014 = vst [vmem:[#allocation64_spill] sm:$0xff] %v3378_v43  ;;  %v5016_v62 = vand.u32 4294901760, %v3345_v13  ;;  %365 = vmatpush2.msra.mxu0 %v3378_v43  ;;  %v5020_v14 = vand.u32 4294901760, %v3370_v38 }
  0x80   : > { %5015 = vst [vmem:[#allocation65_spill] sm:$0xff] %v3382_v21  ;;  %610 = vmatpush1.msra.mxu1 %v609_v47  ;;  %v615_v52 = vand.u32 4294901760, %v614_v46  ;;  %5017 = vst [vmem:[#allocation66_spill] sm:$0xff] %v3391_v61  ;;  %v621_v28 = vand.u32 4294901760, %v620_v1  ;;  %v632_v49 = vsub.f32 %v3356_v12, %v5018_v27  ;;  %v3402_v46 = vsub.f32 %v3247_v39, %v3278_v20  ;;  %v3417_v12 = vld [vmem:[#allocation5 + $0x168] sm:$0xff] }
  0x81   : > { %v626_v2 = vsub.f32 %v3345_v13, %v5016_v62  ;;  %v3404_v62 = vld [vmem:[#allocation5 + $0x170] sm:$0xff]  ;;  %v638_v1 = vsub.f32 %v3370_v38, %v5020_v14  ;;  %367 = vmatprep.subr.mxu0 %v3391_v61  ;;  %v3411_v27 = vand.u32 4294901760, %v3384_v50  ;;  %v3415_v47 = vsub.f32 %v3270_v7, %v3298_v51  ;;  %v3426_v38 = vld [vmem:[#allocation5 + $0x160] sm:$0xff] }
  0x82   : > { %5019 = vst [vmem:[#allocation67_spill] sm:$0xff] %v3402_v46  ;;  %616 = vmatprep.subr.mxu1 %v615_v52  ;;  %v633_v39 = vand.u32 4294901760, %v632_v49  ;;  %v5023_v52 = vand.u32 4294901760, %v3382_v21  ;;  %v3424_v14 = vand.u32 4294901760, %v3393_v34  ;;  %v3435_v49 = vand.u32 4294901760, %v3404_v62 }
  0x83   : > { %v627_v44 = vand.u32 4294901760, %v626_v2  ;;  %5021 = vst [vmem:[#allocation68_spill] sm:$0xff] %v3411_v27  ;;  %5022 = vst [vmem:[#allocation69_spill] sm:$0xff] %v3415_v47  ;;  %622 = vmatpush2.msra.mxu1 %v621_v28  ;;  %v639_v13 = vand.u32 4294901760, %v638_v1  ;;  %369 = vmatpush2.msra.mxu0 %v3411_v27  ;;  %v4777_v7 = vand.u32 4294901760, %v3415_v47  ;;  %v3432_v28 = vsub.f32 %v3280_v32, %v3312_v41 }
  0x84   : > { %v644_v2 = vsub.f32 %v3382_v21, %v5023_v52  ;;  %5024 = vst [vmem:[#allocation70_spill] sm:$0xff] %v3424_v14  ;;  %5026 = vst [vmem:[#allocation72_spill] sm:$0xff] %v3435_v49  ;;  %v3437_v52 = vld [vmem:[#allocation5 + $0x158] sm:$0xff]  ;;  %v5027_v51 = vand.u32 4294901760, %v3402_v46  ;;  %371 = vmatprep.subr.mxu0 %v3424_v14  ;;  %v3445_v1 = vsub.f32 %v3291_v33, %v3323_v53  ;;  %v3448_v32 = vand.u32 4294901760, %v3417_v12  ;;  %v3462_v33 = vld [vmem:[#allocation5 + $0x150] sm:$0xff] }
  0x85   : > { %628 = vmatprep.subr.mxu1 %v627_v44  ;;  %5025 = vst [vmem:[#allocation71_spill] sm:$0xff] %v3432_v28  ;;  %v656_v41 = vsub.f32 %v3415_v47, %v4777_v7  ;;  %373 = vmatpush2.msra.mxu0 %v3435_v49  ;;  %v3468_v7 = vsub.f32 %v3314_v30, %v3348_v26  ;;  %v5034_v47 = vand.u32 4294901760, %v3432_v28 }
  0x86   : > { %634 = vmatpush2.msra.mxu1 %v633_v39  ;;  %v645_v20 = vand.u32 4294901760, %v644_v2  ;;  %v650_v44 = vsub.f32 %v3402_v46, %v5027_v51  ;;  %5028 = vst [vmem:[#allocation73_spill] sm:$0xff] %v3445_v1  ;;  %5029 = vst [vmem:[#allocation74_spill] sm:$0xff] %v3448_v32  ;;  %v3457_v51 = vsub.f32 %v3304_v19, %v3336_v36  ;;  %v3460_v2 = vand.u32 4294901760, %v3426_v38  ;;  %v3473_v19 = vld [vmem:[#allocation5 + $0x148] sm:$0xff] }
  0x87   : > { %640 = vmatprep.subr.mxu1 %v639_v13  ;;  %v4788_v13 = vand.u32 4294901760, %v3445_v1  ;;  %375 = vmatprep.subr.mxu0 %v3448_v32  ;;  %5032 = vst [vmem:[#allocation77_spill] sm:$0xff] %v3468_v7  ;;  %v3471_v39 = vand.u32 4294901760, %v3437_v52  ;;  %v657_v36 = vand.u32 4294901760, %v656_v41  ;;  %v662_v46 = vsub.f32 %v3432_v28, %v5034_v47 }
  0x88   : > { %5030 = vst [vmem:[#allocation75_spill] sm:$0xff] %v3457_v51  ;;  %5031 = vst [vmem:[#allocation76_spill] sm:$0xff] %v3460_v2  ;;  %646 = vmatpush2.msra.mxu1 %v645_v20  ;;  %v651_v53 = vand.u32 4294901760, %v650_v44  ;;  %377 = vmatpush2.msra.mxu0 %v3460_v2  ;;  %v3482_v44 = vsub.f32 %v3325_v24, %v3359_v56  ;;  %v3490_v41 = vand.u32 4294901760, %v3462_v33  ;;  %v3496_v20 = vld [vmem:[#allocation5 + $0x140] sm:$0xff]  ;;  %v3503_v26 = vand.u32 4294901760, %v3473_v19 }
  0x89   : > { %5033 = vst [vmem:[#allocation78_spill] sm:$0xff] %v3471_v39  ;;  %v668_v30 = vsub.f32 %v3445_v1, %v4788_v13  ;;  %379 = vmatprep.subr.mxu0 %v3471_v39  ;;  %v3494_v47 = vsub.f32 %v3350_v37, %v3378_v43  ;;  %v663_v24 = vand.u32 4294901760, %v662_v46  ;;  %v3505_v1 = vld [vmem:[#allocation5 + $0x138] sm:$0xff]  ;;  %v5040_v21 = vand.u32 4294901760, %v3468_v7 }
  0x8a   : > { %5035 = vst [vmem:[#allocation79_spill] sm:$0xff] %v3482_v44  ;;  %652 = vmatprep.subr.mxu1 %v651_v53  ;;  %5036 = vst [vmem:[#allocation80_spill] sm:$0xff] %v3490_v41  ;;  %v5038_v53 = vand.u32 4294901760, %v3457_v51  ;;  %381 = vmatpush2.msra.mxu0 %v3490_v41  ;;  %v3514_v46 = vsub.f32 %v3361_v29, %v3391_v61  ;;  %v5042_v43 = vand.u32 4294901760, %v3482_v44 }
  0x8b   : > { %5037 = vst [vmem:[#allocation81_spill] sm:$0xff] %v3494_v47  ;;  %658 = vmatpush2.msra.mxu1 %v657_v36  ;;  %5039 = vst [vmem:[#allocation82_spill] sm:$0xff] %v3503_v26  ;;  %v669_v28 = vand.u32 4294901760, %v668_v30  ;;  %v680_v37 = vsub.f32 %v3468_v7, %v5040_v21  ;;  %383 = vmatprep.subr.mxu0 %v3503_v26  ;;  %v3523_v21 = vand.u32 4294901760, %v3496_v20  ;;  %v3529_v7 = vld [vmem:[#allocation5 + $0x128] sm:$0xff] }
  0x8c   : > { %v674_v56 = vsub.f32 %v3457_v51, %v5038_v53  ;;  %5041 = vst [vmem:[#allocation83_spill] sm:$0xff] %v3514_v46  ;;  %v3516_v53 = vld [vmem:[#allocation5 + $0x130] sm:$0xff]  ;;  %664 = vmatprep.subr.mxu1 %v663_v24  ;;  %v686_v30 = vsub.f32 %v3482_v44, %v5042_v43  ;;  %v3527_v36 = vsub.f32 %v3384_v50, %v3411_v27  ;;  %v5045_v24 = vand.u32 4294901760, %v3494_v47  ;;  %v3538_v44 = vld [vmem:[#allocation5 + $0x120] sm:$0xff] }
  0x8d   : > { %5043 = vst [vmem:[#allocation84_spill] sm:$0xff] %v3523_v21  ;;  %670 = vmatpush2.msra.mxu1 %v669_v28  ;;  %v681_v29 = vand.u32 4294901760, %v680_v37  ;;  %v3536_v43 = vand.u32 4294901760, %v3505_v1  ;;  %385 = vmatpush2.msra.mxu0 %v3523_v21  ;;  %v3544_v28 = vsub.f32 %v3393_v34, %v3424_v14  ;;  %v3547_v37 = vand.u32 4294901760, %v3516_v53 }
  0x8e   : > { %v675_v13 = vand.u32 4294901760, %v674_v56  ;;  %5044 = vst [vmem:[#allocation85_spill] sm:$0xff] %v3527_v36  ;;  %v692_v56 = vsub.f32 %v3494_v47, %v5045_v24  ;;  %v687_v51 = vand.u32 4294901760, %v686_v30  ;;  %v4811_v50 = vand.u32 4294901760, %v3527_v36  ;;  %v3549_v24 = vld [vmem:[#allocation5 + $0x118] sm:$0xff] }
  0x8f   : > { %5046 = vst [vmem:[#allocation86_spill] sm:$0xff] %v3544_v28  ;;  %v5047_v27 = vand.u32 4294901760, %v3514_v46  ;;  %387 = vmatprep.subr.mxu0 %v3536_v43  ;;  %v3557_v30 = vsub.f32 %v3404_v62, %v3435_v49  ;;  %v3560_v34 = vand.u32 4294901760, %v3529_v7  ;;  %v3574_v62 = vld [vmem:[#allocation5 + $0x110] sm:$0xff] }
  0x90   : > { %676 = vmatprep.subr.mxu1 %v675_v13  ;;  %v693_v61 = vand.u32 4294901760, %v692_v56  ;;  %v704_v14 = vsub.f32 %v3527_v36, %v4811_v50  ;;  %389 = vmatpush2.msra.mxu0 %v3547_v37  ;;  %v3572_v56 = vand.u32 4294901760, %v3538_v44  ;;  %v3580_v50 = vsub.f32 %v3426_v38, %v3460_v2  ;;  %v3608_v2 = vld [vmem:[#allocation5 + $0x100] sm:$0xff] }
  0x91   : > { %682 = vmatpush2.msra.mxu1 %v681_v29  ;;  %v698_v13 = vsub.f32 %v3514_v46, %v5047_v27  ;;  %5048 = vst [vmem:[#allocation87_spill] sm:$0xff] %v3557_v30  ;;  %5049 = vst [vmem:[#allocation88_spill] sm:$0xff] %v3560_v34  ;;  %v3569_v27 = vsub.f32 %v3417_v12, %v3448_v32  ;;  %391 = vmatprep.subr.mxu0 %v3560_v34  ;;  %v3583_v29 = vand.u32 4294901760, %v3549_v24  ;;  %v3585_v12 = vld [vmem:[#allocation5 + $0x108] sm:$0xff] }
  0x92   : > { %688 = vmatprep.subr.mxu1 %v687_v51  ;;  %5051 = vst [vmem:[#allocation90_spill] sm:$0xff] %v3572_v56  ;;  %v4820_v51 = vand.u32 4294901760, %v3557_v30  ;;  %5052 = vst [vmem:[#allocation91_spill] sm:$0xff] %v3580_v50  ;;  %v705_v32 = vand.u32 4294901760, %v704_v14  ;;  %v5054_v36 = vand.u32 4294901760, %v3544_v28  ;;  %393 = vmatpush2.msra.mxu0 %v3572_v56  ;;  %v5058_v47 = vand.u32 4294901760, %v3580_v50 }
  0x93   : > { %5050 = vst [vmem:[#allocation89_spill] sm:$0xff] %v3569_v27  ;;  %694 = vmatpush2.msra.mxu1 %v693_v61  ;;  %v699_v49 = vand.u32 4294901760, %v698_v13  ;;  %5053 = vst [vmem:[#allocation92_spill] sm:$0xff] %v3583_v29  ;;  %v3594_v13 = vsub.f32 %v3437_v52, %v3471_v39  ;;  %395 = vmatprep.subr.mxu0 %v3583_v29  ;;  %v3606_v61 = vsub.f32 %v3462_v33, %v3490_v41 }
  0x94   : > { %v710_v46 = vsub.f32 %v3544_v28, %v5054_v36  ;;  %v716_v38 = vsub.f32 %v3557_v30, %v4820_v51  ;;  %v3602_v36 = vand.u32 4294901760, %v3574_v62  ;;  %v5057_v52 = vand.u32 4294901760, %v3569_v27  ;;  %v176_v30 = vld [vmem:[%s2843_s22 + $0x8] sm:$0xff] }
  0x95   : > { %5055 = vst [vmem:[#allocation93_spill] sm:$0xff] %v3594_v13  ;;  %700 = vmatprep.subr.mxu1 %v699_v49  ;;  %5056 = vst [vmem:[#allocation94_spill] sm:$0xff] %v3606_v61  ;;  %v3615_v39 = vand.u32 4294901760, %v3585_v12  ;;  %v728_v33 = vsub.f32 %v3580_v50, %v5058_v47  ;;  %v5060_v41 = vand.u32 4294901760, %v3594_v13  ;;  %v3637_v47 = vsub.f32 %v3496_v20, %v3523_v21 }
  0x96   : > { %706 = vmatpush2.msra.mxu1 %v705_v32  ;;  %v711_v49 = vand.u32 4294901760, %v710_v46  ;;  %v722_v51 = vsub.f32 %v3569_v27, %v5057_v52  ;;  %v717_v28 = vand.u32 4294901760, %v716_v38  ;;  %397 = vmatpush2.msra.mxu0 %v3602_v36  ;;  %v3625_v46 = vsub.f32 %v3473_v19, %v3503_v26  ;;  %v175_v52 = vld [vmem:[%s2843_s22] sm:$0xff] }
  0x97   : > { %v734_v27 = vsub.f32 %v3594_v13, %v5060_v41  ;;  %399 = vmatprep.subr.mxu0 %v3615_v39  ;;  %v3633_v38 = vand.u32 4294901760, %v3608_v2  ;;  %5061 = vst [vmem:[#allocation96_spill] sm:$0xff] %v3637_v47  ;;  %v729_v32 = vand.u32 4294901760, %v728_v33  ;;  %v5062_v19 = vand.u32 4294901760, %v3606_v61 }
  0x98   : > { %5059 = vst [vmem:[#allocation95_spill] sm:$0xff] %v3625_v46  ;;  %712 = vmatprep.subr.mxu1 %v711_v49  ;;  %v723_v14 = vand.u32 4294901760, %v722_v51  ;;  %v4840_v51 = vand.u32 4294901760, %v3625_v46  ;;  %v3643_v26 = vand.u32 4294901760, %v176_v30  ;;  %v4839_v13 = vand.u32 4294901760, %v3637_v47 }
  0x99   : > { %718 = vmatpush2.msra.mxu1 %v717_v28  ;;  %v740_v49 = vsub.f32 %v3606_v61, %v5062_v19  ;;  %v735_v41 = vand.u32 4294901760, %v734_v27  ;;  %401 = vmatpush2.msra.mxu0 %v3633_v38  ;;  %v3649_v20 = vsub.f32 %v3505_v1, %v3536_v43  ;;  %v3651_v28 = vand.u32 4294901760, %v175_v52 }
  0x9a   : > { %5063 = vst [vmem:[#allocation97_spill] sm:$0xff] %v3643_v26  ;;  %724 = vmatprep.subr.mxu1 %v723_v14  ;;  %v746_v19 = vsub.f32 %v3625_v46, %v4840_v51  ;;  %v3657_v21 = vsub.f32 %v176_v30, %v3643_v26  ;;  %814 = vmatprep.subr.mxu0 %v2873_v18 }
  0x9b   : > { %5064 = vst [vmem:[#allocation98_spill] sm:$0xff] %v3649_v20  ;;  %5065 = vst [vmem:[#allocation99_spill] sm:$0xff] %v3651_v28  ;;  %730 = vmatpush2.msra.mxu1 %v729_v32  ;;  %v741_v33 = vand.u32 4294901760, %v740_v49  ;;  %v3662_v27 = vsub.f32 %v3516_v53, %v3547_v37  ;;  %v752_v1 = vsub.f32 %v3637_v47, %v4839_v13  ;;  %v4843_v14 = vand.u32 4294901760, %v3649_v20 }
  0x9c   : > { %736 = vmatprep.subr.mxu1 %v735_v41  ;;  %v3669_v32 = vsub.f32 %v175_v52, %v3651_v28  ;;  %v3673_v30 = vsub.f32 %v3529_v7, %v3560_v34  ;;  %804 = vmatprep.mubr.f32.mxu1 %v3643_v26  ;;  %v747_v49 = vand.u32 4294901760, %v746_v19  ;;  %v4844_v53 = vand.u32 4294901760, %v3657_v21 }
  0x9d   : > { %5066 = vst [vmem:[#allocation100_spill] sm:$0xff] %v3662_v27  ;;  %742 = vmatpush2.msra.mxu1 %v741_v33  ;;  %v4847_v41 = vand.u32 4294901760, %v3662_v27  ;;  %v3680_v13 = vsub.f32 %v3538_v44, %v3572_v56  ;;  %v753_v51 = vand.u32 4294901760, %v752_v1  ;;  %v758_v52 = vsub.f32 %v3649_v20, %v4843_v14 }
  0x9e   : > { %5067 = vst [vmem:[#allocation101_spill] sm:$0xff] %v3673_v30  ;;  %v4852_v7 = vand.u32 4294901760, %v3669_v32  ;;  %v4853_v34 = vand.u32 4294901760, %v3673_v30  ;;  %748 = vmatprep.subr.mxu1 %v747_v49  ;;  %v405_v33 = vsub.f32 %v3657_v21, %v4844_v53  ;;  %v3696_v1 = vsub.f32 %v3549_v24, %v3583_v29 }
  0x9f   : > { %v764_v19 = vsub.f32 %v3662_v27, %v4847_v41  ;;  %754 = vmatpush2.msra.mxu1 %v753_v51  ;;  %v759_v14 = vand.u32 4294901760, %v758_v52  ;;  %v3706_v26 = vsub.f32 %v3574_v62, %v3602_v36  ;;  %v5070_v56 = vand.u32 4294901760, %v3680_v13 }
  0xa0   : > { %5068 = vst [vmem:[#allocation102_spill] sm:$0xff] %v3696_v1  ;;  %v411_v49 = vsub.f32 %v3669_v32, %v4852_v7  ;;  %v770_v53 = vsub.f32 %v3673_v30, %v4853_v34  ;;  %v406_v41 = vand.u32 4294901760, %v405_v33  ;;  %v4857_v51 = vand.u32 4294901760, %v3696_v1 }
  0xa1   : > { %5069 = vst [vmem:[#allocation103_spill] sm:$0xff] %v3706_v26  ;;  %v765_v44 = vand.u32 4294901760, %v764_v19  ;;  %v776_v24 = vsub.f32 %v3680_v13, %v5070_v56  ;;  %760 = vmatprep.subr.mxu1 %v759_v14  ;;  %v4856_v7 = vand.u32 4294901760, %v3706_v26  ;;  %v3715_v34 = vsub.f32 %v3585_v12, %v3615_v39 }
  0xa2   : > { %v412_v52 = vand.u32 4294901760, %v411_v49  ;;  %v771_v29 = vand.u32 4294901760, %v770_v53  ;;  %407 = vmatprep.mubr.f32.mxu0 %v406_v41  ;;  %v782_v33 = vsub.f32 %v3696_v1, %v4857_v51  ;;  %v3722_v56 = vsub.f32 %v3608_v2, %v3633_v38  ;;  %v5087_v51 = vld [vmem:[#allocation18_spill] sm:$0xff] }
  0xa3   : > { %5071 = vst [vmem:[#allocation104_spill] sm:$0xff] %v3715_v34  ;;  %766 = vmatpush2.msra.mxu1 %v765_v44  ;;  %v777_v62 = vand.u32 4294901760, %v776_v24  ;;  %v788_v14 = vsub.f32 %v3706_v26, %v4856_v7  ;;  %v4855_v12 = vand.u32 4294901760, %v3715_v34  ;;  %v5073_v24 = vld [vmem:[#allocation11_spill] sm:$0xff]  ;;  %v5086_v7 = vld [vmem:[#allocation41_spill] sm:$0xff] }
  0xa4   : > { %5072 = vst [vmem:[#allocation105_spill] sm:$0xff] %v3722_v56  ;;  %413 = vmatmul.mubr.f32.vlgmr.msra.gmra.mxu0 %v412_v52  ;;  %772 = vmatprep.subr.mxu1 %v771_v29  ;;  %v783_v53 = vand.u32 4294901760, %v782_v33  ;;  %v4854_v41 = vand.u32 4294901760, %v3722_v56  ;;  %v5074_v52 = vld [vmem:[#allocation29_spill] sm:$0xff]  ;;  %v5076_v33 = vld [vmem:[#allocation31_spill] sm:$0xff] }
  0xa5   : > { %817 = vmatpush1.msra.mxu0 %v2886_v23  ;;  %778 = vmatpush2.msra.mxu1 %v777_v62  ;;  %v789_v19 = vand.u32 4294901760, %v788_v14  ;;  %v794_v2 = vsub.f32 %v3715_v34, %v4855_v12  ;;  %v5075_v62 = vld [vmem:[#allocation12_spill] sm:$0xff]  ;;  %v5077_v14 = vld [vmem:[#allocation13_spill] sm:$0xff] }
  0xa6   : > { %820 = vmatprep.subr.mxu0 %v2892_v25  ;;  %1006 = vmatprep.mubr.f32.mxu0 %v3657_v21  ;;  %v800_v29 = vsub.f32 %v3722_v56, %v4854_v41  ;;  %v5084_v41 = vld [vmem:[#allocation39_spill] sm:$0xff]  ;;  %v5085_v12 = vld [vmem:[#allocation17_spill] sm:$0xff] }
  0xa7   : > { %823 = vmatpush1.msra.mxu0 %v2906_v31  ;;  %784 = vmatprep.subr.mxu1 %v783_v53  ;;  %v795_v44 = vand.u32 4294901760, %v794_v2  ;;  %v5078_v53 = vld [vmem:[#allocation33_spill] sm:$0xff]  ;;  %v5080_v2 = vld [vmem:[#allocation35_spill] sm:$0xff] }
  0xa8   : > { %826 = vmatprep.subr.mxu0 %v2915_v35  ;;  %790 = vmatpush2.msra.mxu1 %v789_v19  ;;  %v801_v49 = vand.u32 4294901760, %v800_v29  ;;  %v5079_v19 = vld [vmem:[#allocation14_spill] sm:$0xff]  ;;  %v5081_v29 = vld [vmem:[#allocation15_spill] sm:$0xff] }
  0xa9   : > { %829 = vmatpush1.msra.mxu0 %v2928_v40  ;;  %796 = vmatprep.subr.mxu1 %v795_v44  ;;  %v5082_v44 = vld [vmem:[#allocation37_spill] sm:$0xff] }
  0xaa   : > { %832 = vmatprep.subr.mxu0 %v2942_v45  ;;  %802 = vmatpush2.msra.mxu1 %v801_v49  ;;  %v5083_v49 = vld [vmem:[#allocation16_spill] sm:$0xff] }
  0xab   : > { %835 = vmatpush1.msra.mxu0 %v2968_v59  ;;  %806 = vmatmul.mubr.f32.vlgmr.msra.gmra.mxu1 %v3651_v28  ;;  %v5088_v28 = vld [vmem:[#allocation43_spill] sm:$0xff] }
  0xac   : > { %838 = vmatprep.subr.mxu0 %v2980_v0  ;;  %1016 = vmatprep.subr.mxu1 %v2853_v3 }
  0xad   : > { %841 = vmatpush1.msra.mxu0 %v2991_v8  ;;  %1018 = vmatpush1.msra.mxu1 %v2855_v4 }
  0xae   : > { %844 = vmatprep.subr.mxu0 %v3002_v42  ;;  %1020 = vmatprep.subr.mxu1 %v2857_v5 }
  0xaf   : > { %847 = vmatpush1.msra.mxu0 %v3014_v48  ;;  %1022 = vmatpush1.msra.mxu1 %v2859_v9 }
  0xb0   : > { %850 = vmatprep.subr.mxu0 %v3028_v57  ;;  %1024 = vmatprep.subr.mxu1 %v2861_v10 }
  0xb1   : > { %853 = vmatpush1.msra.mxu0 %v3040_v6  ;;  %1026 = vmatpush1.msra.mxu1 %v2863_v11 }
  0xb2   : > { %856 = vmatprep.subr.mxu0 %v3061_v54  ;;  %1028 = vmatprep.subr.mxu1 %v2866_v15 }
  0xb3   : > { %859 = vmatpush1.msra.mxu0 %v3074_v63  ;;  %1030 = vmatpush1.msra.mxu1 %v2868_v16 }
  0xb4   : > { %862 = vmatprep.subr.mxu0 %v3092_v55  ;;  %1032 = vmatprep.subr.mxu1 %v2870_v17 }
  0xb5   : > { %865 = vmatpush1.msra.mxu0 %v3105_v58  ;;  %1034 = vmatpush1.msra.mxu1 %v2883_v22 }
  0xb6   : > { %868 = vmatprep.subr.mxu0 %v3117_v60  ;;  %1036 = vmatprep.subr.mxu1 %v5073_v24 }
  0xb7   : > { %871 = vmatpush1.msra.mxu0 %v5074_v52  ;;  %1038 = vmatpush1.msra.mxu1 %v5075_v62 }
  0xb8   : > { %874 = vmatprep.subr.mxu0 %v5076_v33  ;;  %1040 = vmatprep.subr.mxu1 %v5077_v14 }
  0xb9   : > { %877 = vmatpush1.msra.mxu0 %v5078_v53  ;;  %1042 = vmatpush1.msra.mxu1 %v5079_v19  ;;  %v5089_v53 = vld [vmem:[#allocation19_spill] sm:$0xff]  ;;  %v5090_v19 = vld [vmem:[#allocation45_spill] sm:$0xff] }
  0xba   : > { %880 = vmatprep.subr.mxu0 %v5080_v2  ;;  %1044 = vmatprep.subr.mxu1 %v5081_v29  ;;  %v5091_v2 = vld [vmem:[#allocation20_spill] sm:$0xff]  ;;  %v5092_v29 = vld [vmem:[#allocation47_spill] sm:$0xff] }
  0xbb   : > { %883 = vmatpush1.msra.mxu0 %v5082_v44  ;;  %1046 = vmatpush1.msra.mxu1 %v5083_v49  ;;  %v5093_v44 = vld [vmem:[#allocation21_spill] sm:$0xff] }
  0xbc   : > { %886 = vmatprep.subr.mxu0 %v5084_v41  ;;  %1048 = vmatprep.subr.mxu1 %v5085_v12  ;;  %v5094_v49 = vld [vmem:[#allocation49_spill] sm:$0xff]  ;;  %v5095_v41 = vld [vmem:[#allocation22_spill] sm:$0xff]  ;;  %v5096_v12 = vld [vmem:[#allocation51_spill] sm:$0xff] }
  0xbd   : > { %889 = vmatpush1.msra.mxu0 %v5086_v7  ;;  %1050 = vmatpush1.msra.mxu1 %v5087_v51  ;;  %v5097_v7 = vld [vmem:[#allocation23_spill] sm:$0xff]  ;;  %v5098_v51 = vld [vmem:[#allocation53_spill] sm:$0xff] }
  0xbe   : > { %892 = vmatprep.subr.mxu0 %v5088_v28  ;;  %1052 = vmatprep.subr.mxu1 %v5089_v53  ;;  %v5099_v28 = vld [vmem:[#allocation24_spill] sm:$0xff]  ;;  %v5100_v53 = vld [vmem:[#allocation55_spill] sm:$0xff] }
  0xbf   : > { %895 = vmatpush1.msra.mxu0 %v5090_v19  ;;  %1054 = vmatpush1.msra.mxu1 %v5091_v2  ;;  %v5101_v19 = vld [vmem:[#allocation25_spill] sm:$0xff] }
  0xc0   : > { %898 = vmatprep.subr.mxu0 %v5092_v29  ;;  %1056 = vmatprep.subr.mxu1 %v5093_v44  ;;  %v5102_v2 = vld [vmem:[#allocation57_spill] sm:$0xff]  ;;  %v5103_v29 = vld [vmem:[#allocation26_spill] sm:$0xff]  ;;  %v5104_v44 = vld [vmem:[#allocation59_spill] sm:$0xff] }
  0xc1   : > { %901 = vmatpush1.msra.mxu0 %v5094_v49  ;;  %1058 = vmatpush1.msra.mxu1 %v5095_v41  ;;  %v5105_v49 = vld [vmem:[#allocation27_spill] sm:$0xff]  ;;  %v5106_v41 = vld [vmem:[#allocation61_spill] sm:$0xff] }
  0xc2   : > { %904 = vmatprep.subr.mxu0 %v5096_v12  ;;  %1060 = vmatprep.subr.mxu1 %v5097_v7  ;;  %v5107_v12 = vld [vmem:[#allocation28_spill] sm:$0xff]  ;;  %v5108_v7 = vld [vmem:[#allocation63_spill] sm:$0xff] }
  0xc3   : > { %907 = vmatpush1.msra.mxu0 %v5098_v51  ;;  %1062 = vmatpush1.msra.mxu1 %v5099_v28  ;;  %v5109_v51 = vld [vmem:[#allocation30_spill] sm:$0xff]  ;;  %v5110_v28 = vld [vmem:[#allocation65_spill] sm:$0xff] }
  0xc4   : > { %910 = vmatprep.subr.mxu0 %v5100_v53  ;;  %1064 = vmatprep.subr.mxu1 %v5101_v19  ;;  %v5111_v53 = vld [vmem:[#allocation32_spill] sm:$0xff]  ;;  %v5112_v19 = vld [vmem:[#allocation67_spill] sm:$0xff] }
  0xc5   : > { %913 = vmatpush2.msra.mxu0 %v5102_v2  ;;  %1066 = vmatpush1.msra.mxu1 %v5103_v29  ;;  %v5113_v2 = vld [vmem:[#allocation34_spill] sm:$0xff]  ;;  %v5114_v29 = vld [vmem:[#allocation69_spill] sm:$0xff] }
  0xc6   : > { %916 = vmatprep.subr.mxu0 %v5104_v44  ;;  %1068 = vmatprep.subr.mxu1 %v5105_v49  ;;  %v5115_v44 = vld [vmem:[#allocation36_spill] sm:$0xff]  ;;  %v5116_v49 = vld [vmem:[#allocation71_spill] sm:$0xff] }
  0xc7   : > { %919 = vmatpush2.msra.mxu0 %v5106_v41  ;;  %1070 = vmatpush1.msra.mxu1 %v5107_v12  ;;  %v5117_v41 = vld [vmem:[#allocation38_spill] sm:$0xff]  ;;  %v5118_v12 = vld [vmem:[#allocation73_spill] sm:$0xff] }
  0xc8   : > { %922 = vmatprep.subr.mxu0 %v5108_v7  ;;  %1072 = vmatprep.subr.mxu1 %v5109_v51  ;;  %v5119_v7 = vld [vmem:[#allocation40_spill] sm:$0xff]  ;;  %v5120_v51 = vld [vmem:[#allocation75_spill] sm:$0xff] }
  0xc9   : > { %925 = vmatpush2.msra.mxu0 %v5110_v28  ;;  %1074 = vmatpush1.msra.mxu1 %v5111_v53  ;;  %v5121_v28 = vld [vmem:[#allocation42_spill] sm:$0xff]  ;;  %v5122_v53 = vld [vmem:[#allocation77_spill] sm:$0xff] }
  0xca   : > { %928 = vmatprep.subr.mxu0 %v5112_v19  ;;  %1076 = vmatprep.subr.mxu1 %v5113_v2  ;;  %v5123_v19 = vld [vmem:[#allocation44_spill] sm:$0xff]  ;;  %v5124_v2 = vld [vmem:[#allocation79_spill] sm:$0xff] }
  0xcb   : > { %931 = vmatpush2.msra.mxu0 %v5114_v29  ;;  %1078 = vmatpush1.msra.mxu1 %v5115_v44  ;;  %v5125_v29 = vld [vmem:[#allocation46_spill] sm:$0xff]  ;;  %v5126_v44 = vld [vmem:[#allocation81_spill] sm:$0xff] }
  0xcc   : > { %934 = vmatprep.subr.mxu0 %v5116_v49  ;;  %1080 = vmatprep.subr.mxu1 %v5117_v41  ;;  %v5127_v49 = vld [vmem:[#allocation48_spill] sm:$0xff]  ;;  %v5128_v41 = vld [vmem:[#allocation83_spill] sm:$0xff] }
  0xcd   : > { %937 = vmatpush2.msra.mxu0 %v5118_v12  ;;  %1082 = vmatpush2.msra.mxu1 %v5119_v7  ;;  %v5129_v12 = vld [vmem:[#allocation50_spill] sm:$0xff]  ;;  %v5130_v7 = vld [vmem:[#allocation85_spill] sm:$0xff] }
  0xce   : > { %940 = vmatprep.subr.mxu0 %v5120_v51  ;;  %1084 = vmatprep.subr.mxu1 %v5121_v28  ;;  %v5131_v51 = vld [vmem:[#allocation52_spill] sm:$0xff]  ;;  %v5132_v28 = vld [vmem:[#allocation86_spill] sm:$0xff] }
  0xcf   : > { %943 = vmatpush2.msra.mxu0 %v5122_v53  ;;  %1086 = vmatpush2.msra.mxu1 %v5123_v19  ;;  %v5133_v53 = vld [vmem:[#allocation54_spill] sm:$0xff]  ;;  %v5134_v19 = vld [vmem:[#allocation87_spill] sm:$0xff] }
  0xd0   : > { %946 = vmatprep.subr.mxu0 %v5124_v2  ;;  %1088 = vmatprep.subr.mxu1 %v5125_v29  ;;  %v5135_v2 = vld [vmem:[#allocation56_spill] sm:$0xff]  ;;  %v5136_v29 = vld [vmem:[#allocation89_spill] sm:$0xff] }
  0xd1   : > { %949 = vmatpush2.msra.mxu0 %v5126_v44  ;;  %1090 = vmatpush2.msra.mxu1 %v5127_v49  ;;  %v5137_v44 = vld [vmem:[#allocation58_spill] sm:$0xff] }
  0xd2   : > { %952 = vmatprep.subr.mxu0 %v5128_v41  ;;  %1092 = vmatprep.subr.mxu1 %v5129_v12  ;;  %v5138_v41 = vld [vmem:[#allocation60_spill] sm:$0xff]  ;;  %v5139_v12 = vld [vmem:[#allocation93_spill] sm:$0xff] }
  0xd3   : > { %955 = vmatpush2.msra.mxu0 %v5130_v7  ;;  %1094 = vmatpush2.msra.mxu1 %v5131_v51  ;;  %v5140_v7 = vld [vmem:[#allocation62_spill] sm:$0xff] }
  0xd4   : > { %958 = vmatprep.subr.mxu0 %v5132_v28  ;;  %1096 = vmatprep.subr.mxu1 %v5133_v53  ;;  %v5141_v28 = vld [vmem:[#allocation64_spill] sm:$0xff] }
  0xd5   : > { %961 = vmatpush2.msra.mxu0 %v5134_v19  ;;  %1098 = vmatpush2.msra.mxu1 %v5135_v2  ;;  %v5142_v19 = vld [vmem:[#allocation66_spill] sm:$0xff] }
  0xd6   : > { %964 = vmatprep.subr.mxu0 %v5136_v29  ;;  %1100 = vmatprep.subr.mxu1 %v5137_v44  ;;  %v5143_v29 = vld [vmem:[#allocation68_spill] sm:$0xff] }
  0xd7   : > { %967 = vmatpush2.msra.mxu0 %v3580_v50  ;;  %1102 = vmatpush2.msra.mxu1 %v5138_v41  ;;  %v5144_v50 = vld [vmem:[#allocation70_spill] sm:$0xff] }
  0xd8   : > { %970 = vmatprep.subr.mxu0 %v5139_v12  ;;  %1104 = vmatprep.subr.mxu1 %v5140_v7  ;;  %v5145_v12 = vld [vmem:[#allocation72_spill] sm:$0xff] }
  0xd9   : > { %973 = vmatpush2.msra.mxu0 %v3606_v61  ;;  %1106 = vmatpush2.msra.mxu1 %v5141_v28  ;;  %v5146_v61 = vld [vmem:[#allocation74_spill] sm:$0xff] }
  0xda   : > { %976 = vmatprep.subr.mxu0 %v3625_v46  ;;  %1108 = vmatprep.subr.mxu1 %v5142_v19  ;;  %v5147_v46 = vld [vmem:[#allocation76_spill] sm:$0xff] }
  0xdb   : > { %979 = vmatpush2.msra.mxu0 %v3637_v47  ;;  %1110 = vmatpush2.msra.mxu1 %v5143_v29  ;;  %v5148_v47 = vld [vmem:[#allocation78_spill] sm:$0xff] }
  0xdc   : > { %982 = vmatprep.subr.mxu0 %v3649_v20  ;;  %1112 = vmatprep.subr.mxu1 %v5144_v50  ;;  %v5149_v20 = vld [vmem:[#allocation80_spill] sm:$0xff] }
  0xdd   : > { %985 = vmatpush2.msra.mxu0 %v3662_v27  ;;  %1114 = vmatpush2.msra.mxu1 %v5145_v12  ;;  %v5150_v27 = vld [vmem:[#allocation82_spill] sm:$0xff] }
  0xde   : > { %988 = vmatprep.subr.mxu0 %v3673_v30  ;;  %1116 = vmatprep.subr.mxu1 %v5146_v61  ;;  %v5151_v30 = vld [vmem:[#allocation84_spill] sm:$0xff] }
  0xdf   : > { %991 = vmatpush2.msra.mxu0 %v3680_v13  ;;  %1118 = vmatpush2.msra.mxu1 %v5147_v46 }
  0xe0   : > { %994 = vmatprep.subr.mxu0 %v3696_v1  ;;  %1120 = vmatprep.subr.mxu1 %v5148_v47  ;;  %v5152_v1 = vand.u32 4294901760, %v2873_v18  ;;  %v5159_v18 = vand.u32 4294901760, %v2915_v35  ;;  %v5164_v35 = vand.u32 4294901760, %v3669_v32 }
  0xe1   : > { %997 = vmatpush2.msra.mxu0 %v3706_v26  ;;  %1122 = vmatpush2.msra.mxu1 %v5149_v20  ;;  %v5153_v26 = vand.u32 4294901760, %v2886_v23  ;;  %v5154_v20 = vld [vmem:[#allocation88_spill] sm:$0xff]  ;;  %v5160_v23 = vand.u32 4294901760, %v2928_v40  ;;  %v5166_v40 = vand.u32 4294901760, %v2991_v8 }
  0xe2   : > { %1000 = vmatprep.subr.mxu0 %v3715_v34  ;;  %1124 = vmatprep.subr.mxu1 %v5150_v27  ;;  %v5155_v27 = vand.u32 4294901760, %v2892_v25  ;;  %v5158_v34 = vld [vmem:[#allocation92_spill] sm:$0xff]  ;;  %v5161_v25 = vand.u32 4294901760, %v2942_v45  ;;  %v5167_v45 = vand.u32 4294901760, %v3002_v42  ;;  %v5180_v42 = vld [vmem:[#allocation14_spill] sm:$0xff] }
  0xe3   : > { %1003 = vmatpush2.msra.mxu0 %v3722_v56  ;;  %1126 = vmatpush2.msra.mxu1 %v5151_v30  ;;  %v5156_v56 = vld [vmem:[#allocation90_spill] sm:$0xff]  ;;  %v5157_v30 = vand.u32 4294901760, %v2906_v31  ;;  %v5162_v31 = vand.u32 4294901760, %v3657_v21  ;;  %v5190_v21 = vld [vmem:[#allocation41_spill] sm:$0xff] }
  0xe4   : > { %1009 = vmatmul.mubr.f32.vlgmr.msra.gmra.mxu0 %v3669_v32  ;;  %1128 = vmatprep.subr.mxu1 %v3536_v43  ;;  %v5191_v32 = vand.u32 4294901760, %v5190_v21 }
  0xe5   : > { %1159 = vmatprep.subr.mxu0 %v5152_v1  ;;  %1130 = vmatpush2.msra.mxu1 %v3547_v37  ;;  %v5193_v1 = vld [vmem:[#allocation43_spill] sm:$0xff] }
  0xe6   : > { %1163 = vmatpush1.msra.mxu0 %v5153_v26  ;;  %1132 = vmatprep.subr.mxu1 %v5154_v20  ;;  %v5163_v26 = vand.u32 4294901760, %v2968_v59  ;;  %v5168_v59 = vand.u32 4294901760, %v3014_v48  ;;  %v5183_v48 = vld [vmem:[#allocation15_spill] sm:$0xff] }
  0xe7   : > { %1167 = vmatprep.subr.mxu0 %v5155_v27  ;;  %1134 = vmatpush2.msra.mxu1 %v5156_v56  ;;  %v5165_v27 = vand.u32 4294901760, %v2980_v0  ;;  %v5169_v0 = vand.u32 4294901760, %v3028_v57 }
  0xe8   : > { %1171 = vmatpush1.msra.mxu0 %v5157_v30  ;;  %1136 = vmatprep.subr.mxu1 %v5158_v34  ;;  %v5192_v30 = vld [vmem:[#allocation18_spill] sm:$0xff] }
  0xe9   : > { %1175 = vmatprep.subr.mxu0 %v5159_v18  ;;  %1138 = vmatpush2.msra.mxu1 %v3602_v36  ;;  %v5199_v18 = vld [vmem:[#allocation47_spill] sm:$0xff] }
  0xea   : > { %1179 = vmatpush1.msra.mxu0 %v5160_v23  ;;  %1140 = vmatprep.subr.mxu1 %v3615_v39  ;;  %v5200_v23 = vand.u32 4294901760, %v5199_v18 }
  0xeb   : > { %1183 = vmatprep.subr.mxu0 %v5161_v25  ;;  %1142 = vmatpush2.msra.mxu1 %v3633_v38  ;;  %v5201_v25 = vld [vmem:[#allocation21_spill] sm:$0xff] }
  0xec   : > { %1146 = vmatprep.mubr.f32.mxu1 %v5162_v31  ;;  %1187 = vmatpush1.msra.mxu0 %v5163_v26  ;;  %v5202_v31 = vld [vmem:[#allocation49_spill] sm:$0xff] }
  0xed   : > { %1150 = vmatmul.mubr.f32.vlgmr.msra.gmra.mxu1 %v5164_v35  ;;  %1191 = vmatprep.subr.mxu0 %v5165_v27  ;;  %v5203_v26 = vand.u32 4294901760, %v5202_v31  ;;  %v5204_v35 = vld [vmem:[#allocation22_spill] sm:$0xff]  ;;  %v5205_v27 = vld [vmem:[#allocation51_spill] sm:$0xff] }
  0xee   : > { %1422 = vmatprep.subr.mxu1 %v2853_v3  ;;  %1195 = vmatpush1.msra.mxu0 %v5166_v40  ;;  %v5170_v3 = vand.u32 4294901760, %v3040_v6  ;;  %v5187_v6 = vld [vmem:[#allocation39_spill] sm:$0xff]  ;;  %v5206_v40 = vand.u32 4294901760, %v5205_v27 }
  0xef   : > { %1424 = vmatpush1.msra.mxu1 %v2855_v4  ;;  %1199 = vmatprep.subr.mxu0 %v5167_v45  ;;  %v5171_v4 = vand.u32 4294901760, %v3061_v54  ;;  %v5184_v54 = vld [vmem:[#allocation37_spill] sm:$0xff]  ;;  %v5207_v45 = vld [vmem:[#allocation23_spill] sm:$0xff] }
  0xf0   : > { %1426 = vmatprep.subr.mxu1 %v2857_v5  ;;  %1203 = vmatpush1.msra.mxu0 %v5168_v59  ;;  %v5172_v5 = vand.u32 4294901760, %v3074_v63  ;;  %v5185_v57 = vand.u32 4294901760, %v5184_v54  ;;  %v5186_v63 = vld [vmem:[#allocation16_spill] sm:$0xff]  ;;  %v5208_v59 = vld [vmem:[#allocation53_spill] sm:$0xff] }
  0xf1   : > { %1428 = vmatpush1.msra.mxu1 %v2859_v9  ;;  %1207 = vmatprep.subr.mxu0 %v5169_v0  ;;  %v5173_v9 = vand.u32 4294901760, %v3092_v55  ;;  %v5188_v55 = vand.u32 4294901760, %v5187_v6  ;;  %v5209_v0 = vand.u32 4294901760, %v5208_v59 }
  0xf2   : > { %1430 = vmatprep.subr.mxu1 %v2861_v10  ;;  %1211 = vmatpush1.msra.mxu0 %v5170_v3  ;;  %v5174_v10 = vand.u32 4294901760, %v3105_v58  ;;  %v5189_v58 = vld [vmem:[#allocation17_spill] sm:$0xff]  ;;  %v5210_v3 = vld [vmem:[#allocation24_spill] sm:$0xff] }
  0xf3   : > { %1432 = vmatpush1.msra.mxu1 %v2863_v11  ;;  %1215 = vmatprep.subr.mxu0 %v5171_v4  ;;  %v5175_v11 = vand.u32 4294901760, %v3117_v60  ;;  %v5211_v4 = vld [vmem:[#allocation55_spill] sm:$0xff] }
  0xf4   : > { %1434 = vmatprep.subr.mxu1 %v2866_v15  ;;  %1219 = vmatpush1.msra.mxu0 %v5172_v5  ;;  %v5176_v15 = vand.u32 4294901760, %v5074_v52  ;;  %v5195_v52 = vld [vmem:[#allocation19_spill] sm:$0xff]  ;;  %v5212_v5 = vand.u32 4294901760, %v5211_v4 }
  0xf5   : > { %1436 = vmatpush1.msra.mxu1 %v2868_v16  ;;  %1223 = vmatprep.subr.mxu0 %v5173_v9  ;;  %v5177_v16 = vand.u32 4294901760, %v5076_v33  ;;  %v5213_v9 = vld [vmem:[#allocation25_spill] sm:$0xff] }
  0xf6   : > { %1438 = vmatprep.subr.mxu1 %v2870_v17  ;;  %1227 = vmatpush1.msra.mxu0 %v5174_v10  ;;  %v5178_v17 = vld [vmem:[#allocation33_spill] sm:$0xff] }
  0xf7   : > { %1440 = vmatpush1.msra.mxu1 %v2883_v22  ;;  %1231 = vmatprep.subr.mxu0 %v5175_v11  ;;  %v5179_v8 = vand.u32 4294901760, %v5178_v17  ;;  %v5181_v22 = vld [vmem:[#allocation35_spill] sm:$0xff]  ;;  %v5214_v10 = vld [vmem:[#allocation57_spill] sm:$0xff] }
  0xf8   : > { %1442 = vmatprep.subr.mxu1 %v5073_v24  ;;  %1235 = vmatpush1.msra.mxu0 %v5176_v15  ;;  %v5182_v60 = vand.u32 4294901760, %v5181_v22  ;;  %v5194_v24 = vand.u32 4294901760, %v5193_v1  ;;  %v5215_v11 = vand.u32 4294901760, %v5214_v10  ;;  %v5216_v15 = vld [vmem:[#allocation26_spill] sm:$0xff] }
  0xf9   : > { %1444 = vmatpush1.msra.mxu1 %v5075_v62  ;;  %1239 = vmatprep.subr.mxu0 %v5177_v16  ;;  %v5196_v62 = vld [vmem:[#allocation45_spill] sm:$0xff]  ;;  %v5217_v16 = vld [vmem:[#allocation59_spill] sm:$0xff]  ;;  %v5254_v10 = vld [vmem:[#allocation50_spill] sm:$0xff] }
  0xfa   : > { %1446 = vmatprep.subr.mxu1 %v5077_v14  ;;  %1243 = vmatpush1.msra.mxu0 %v5179_v8  ;;  %v5197_v33 = vand.u32 4294901760, %v5196_v62  ;;  %v5198_v14 = vld [vmem:[#allocation20_spill] sm:$0xff]  ;;  %v5218_v17 = vand.u32 4294901760, %v5217_v16  ;;  %v5219_v8 = vld [vmem:[#allocation27_spill] sm:$0xff]  ;;  %v273_v16 = vld [vmem:[#allocation5 + $0x2f8] sm:$0xff] }
  0xfb   : > { %1448 = vmatpush1.msra.mxu1 %v5180_v42  ;;  %1247 = vmatprep.subr.mxu0 %v5182_v60  ;;  %v5220_v42 = vld [vmem:[#allocation61_spill] sm:$0xff]  ;;  %v5222_v60 = vld [vmem:[#allocation28_spill] sm:$0xff] }
  0xfc   : > { %1450 = vmatprep.subr.mxu1 %v5183_v48  ;;  %1251 = vmatpush1.msra.mxu0 %v5185_v57  ;;  %v5221_v22 = vand.u32 4294901760, %v5220_v42  ;;  %v5223_v48 = vld [vmem:[#allocation63_spill] sm:$0xff]  ;;  %v5225_v57 = vld [vmem:[#allocation30_spill] sm:$0xff] }
  0xfd   : > { %1452 = vmatpush1.msra.mxu1 %v5186_v63  ;;  %1255 = vmatprep.subr.mxu0 %v5188_v55  ;;  %v5224_v54 = vand.u32 4294901760, %v5223_v48  ;;  %v5226_v63 = vld [vmem:[#allocation65_spill] sm:$0xff]  ;;  %v5228_v55 = vld [vmem:[#allocation32_spill] sm:$0xff]  ;;  %v270_v48 = vld [vmem:[#allocation5 + $0x2e0] sm:$0xff] }
  0xfe   : > { %1454 = vmatprep.subr.mxu1 %v5189_v58  ;;  %1259 = vmatpush1.msra.mxu0 %v5191_v32  ;;  %v5227_v6 = vand.u32 4294901760, %v5226_v63  ;;  %v5229_v58 = vld [vmem:[#allocation67_spill] sm:$0xff]  ;;  %v5231_v32 = vld [vmem:[#allocation34_spill] sm:$0xff] }
  0xff   : > { %1456 = vmatpush1.msra.mxu1 %v5192_v30  ;;  %1263 = vmatprep.subr.mxu0 %v5194_v24  ;;  %v5230_v21 = vand.u32 4294901760, %v5229_v58  ;;  %v5232_v30 = vld [vmem:[#allocation69_spill] sm:$0xff]  ;;  %v5234_v24 = vld [vmem:[#allocation36_spill] sm:$0xff] }
 0x100   : > { %1458 = vmatprep.subr.mxu1 %v5195_v52  ;;  %1267 = vmatpush1.msra.mxu0 %v5197_v33  ;;  %v5233_v1 = vand.u32 4294901760, %v5232_v30  ;;  %v5235_v52 = vld [vmem:[#allocation71_spill] sm:$0xff]  ;;  %v5237_v33 = vld [vmem:[#allocation38_spill] sm:$0xff]  ;;  %v4026_v30 = vand.u32 4294901760, %v270_v48 }
 0x101   : > { %1460 = vmatpush1.msra.mxu1 %v5198_v14  ;;  %1271 = vmatprep.subr.mxu0 %v5200_v23  ;;  %v5236_v62 = vand.u32 4294901760, %v5235_v52  ;;  %v5238_v14 = vld [vmem:[#allocation73_spill] sm:$0xff]  ;;  %v5240_v23 = vld [vmem:[#allocation40_spill] sm:$0xff] }
 0x102   : > { %1462 = vmatprep.subr.mxu1 %v5201_v25  ;;  %1275 = vmatpush1.msra.mxu0 %v5203_v26  ;;  %v5239_v18 = vand.u32 4294901760, %v5238_v14  ;;  %v5241_v25 = vld [vmem:[#allocation75_spill] sm:$0xff]  ;;  %v5243_v26 = vld [vmem:[#allocation42_spill] sm:$0xff]  ;;  %v267_v52 = vld [vmem:[#allocation5 + $0x2c8] sm:$0xff] }
 0x103   : > { %1464 = vmatpush1.msra.mxu1 %v5204_v35  ;;  %1279 = vmatprep.subr.mxu0 %v5206_v40  ;;  %v5242_v31 = vand.u32 4294901760, %v5241_v25  ;;  %v5244_v35 = vld [vmem:[#allocation77_spill] sm:$0xff]  ;;  %v5246_v40 = vld [vmem:[#allocation44_spill] sm:$0xff] }
 0x104   : > { %1466 = vmatprep.subr.mxu1 %v5207_v45  ;;  %1283 = vmatpush1.msra.mxu0 %v5209_v0  ;;  %v5245_v27 = vand.u32 4294901760, %v5244_v35  ;;  %v5247_v45 = vld [vmem:[#allocation79_spill] sm:$0xff]  ;;  %v5249_v0 = vld [vmem:[#allocation46_spill] sm:$0xff]  ;;  %v5272_v25 = vld [vmem:[#allocation96_spill] sm:$0xff] }
 0x105   : > { %1468 = vmatpush1.msra.mxu1 %v5210_v3  ;;  %1287 = vmatprep.subr.mxu0 %v5212_v5  ;;  %v5248_v59 = vand.u32 4294901760, %v5247_v45  ;;  %v5250_v3 = vld [vmem:[#allocation81_spill] sm:$0xff]  ;;  %v5252_v5 = vld [vmem:[#allocation83_spill] sm:$0xff] }
 0x106   : > { %1470 = vmatprep.subr.mxu1 %v5213_v9  ;;  %1291 = vmatpush2.msra.mxu0 %v5215_v11  ;;  %v5251_v4 = vand.u32 4294901760, %v5250_v3  ;;  %v5253_v9 = vand.u32 4294901760, %v5252_v5  ;;  %v5255_v11 = vld [vmem:[#allocation85_spill] sm:$0xff]  ;;  %v262_v3 = vld [vmem:[#allocation5 + $0x2a0] sm:$0xff] }
 0x107   : > { %1472 = vmatpush1.msra.mxu1 %v5216_v15  ;;  %1295 = vmatprep.subr.mxu0 %v5218_v17  ;;  %v5256_v15 = vand.u32 4294901760, %v5255_v11  ;;  %v272_v17 = vld [vmem:[#allocation5 + $0x2f0] sm:$0xff] }
 0x108   : > { %1474 = vmatprep.subr.mxu1 %v5219_v8  ;;  %1299 = vmatpush2.msra.mxu0 %v5221_v22  ;;  %v5257_v8 = vld [vmem:[#allocation86_spill] sm:$0xff]  ;;  %v271_v22 = vld [vmem:[#allocation5 + $0x2e8] sm:$0xff]  ;;  %v4016_v63 = vand.u32 4294901760, %v272_v17  ;;  %v264_v45 = vld [vmem:[#allocation5 + $0x2b0] sm:$0xff] }
 0x109   : > { %1476 = vmatpush1.msra.mxu1 %v5222_v60  ;;  %1303 = vmatprep.subr.mxu0 %v5224_v54  ;;  %v5258_v42 = vand.u32 4294901760, %v5257_v8  ;;  %v5259_v60 = vld [vmem:[#allocation87_spill] sm:$0xff]  ;;  %v5261_v54 = vld [vmem:[#allocation89_spill] sm:$0xff]  ;;  %v5285_v8 = vld [vmem:[#allocation102_spill] sm:$0xff] }
 0x10a   : > { %1478 = vmatprep.subr.mxu1 %v5225_v57  ;;  %1307 = vmatpush2.msra.mxu0 %v5227_v6  ;;  %v5262_v57 = vand.u32 4294901760, %v5261_v54  ;;  %v269_v6 = vld [vmem:[#allocation5 + $0x2d8] sm:$0xff]  ;;  %v4037_v14 = vsub.f32 %v272_v17, %v4016_v63 }
 0x10b   : > { %1480 = vmatpush1.msra.mxu1 %v5228_v55  ;;  %1311 = vmatprep.subr.mxu0 %v5230_v21  ;;  %v5263_v55 = vld [vmem:[#allocation91_spill] sm:$0xff]  ;;  %v268_v21 = vld [vmem:[#allocation5 + $0x2d0] sm:$0xff] }
 0x10c   : > { %1482 = vmatprep.subr.mxu1 %v5231_v32  ;;  %1315 = vmatpush2.msra.mxu0 %v5233_v1  ;;  %v5264_v58 = vand.u32 4294901760, %v5263_v55  ;;  %v4879_v11 = vand.u32 4294901760, %v4037_v14 }
 0x10d   : > { %1484 = vmatpush1.msra.mxu1 %v5234_v24  ;;  %1319 = vmatprep.subr.mxu0 %v5236_v62  ;;  %v4031_v24 = vand.u32 4294901760, %v269_v6  ;;  %v266_v62 = vld [vmem:[#allocation5 + $0x2c0] sm:$0xff] }
 0x10e   : > { %1486 = vmatprep.subr.mxu1 %v5237_v33  ;;  %1323 = vmatpush2.msra.mxu0 %v5239_v18  ;;  %v265_v18 = vld [vmem:[#allocation5 + $0x2b8] sm:$0xff] }
 0x10f   : > { %1488 = vmatpush2.msra.mxu1 %v5240_v23  ;;  %1327 = vmatprep.subr.mxu0 %v5242_v31 }
 0x110   : > { %1490 = vmatprep.subr.mxu1 %v5243_v26  ;;  %1331 = vmatpush2.msra.mxu0 %v5245_v27  ;;  %v5274_v26 = vld [vmem:[#allocation98_spill] sm:$0xff]  ;;  %v4056_v27 = vand.u32 4294901760, %v267_v52 }
 0x111   : > { %1492 = vmatpush2.msra.mxu1 %v5246_v40  ;;  %1335 = vmatprep.subr.mxu0 %v5248_v59  ;;  %v5275_v35 = vand.u32 4294901760, %v5274_v26  ;;  %v4058_v40 = vand.u32 4294901760, %v266_v62  ;;  %v5278_v59 = vld [vmem:[#allocation100_spill] sm:$0xff] }
 0x112   : > { %1494 = vmatprep.subr.mxu1 %v5249_v0  ;;  %1339 = vmatpush2.msra.mxu0 %v5251_v4  ;;  %5276 = vst [vmem:[#allocation29_spill] sm:$0xff] %v4056_v27  ;;  %v5279_v0 = vand.u32 4294901760, %v5278_v59  ;;  %v4066_v4 = vsub.f32 %v269_v6, %v4031_v24  ;;  %v5300_v59 = vld [vmem:[#allocation84_spill] sm:$0xff] }
 0x113   : > { %1496 = vmatpush2.msra.mxu1 %v5127_v49  ;;  %1343 = vmatprep.subr.mxu0 %v5253_v9  ;;  %v5260_v49 = vand.u32 4294901760, %v5259_v60  ;;  %5277 = vst [vmem:[#allocation12_spill] sm:$0xff] %v4058_v40 }
 0x114   : > { %1498 = vmatprep.subr.mxu1 %v5254_v10  ;;  %1347 = vmatpush2.msra.mxu0 %v5256_v15  ;;  %v263_v15 = vld [vmem:[#allocation5 + $0x2a8] sm:$0xff] }
 0x115   : > { %1500 = vmatpush2.msra.mxu1 %v5131_v51  ;;  %1351 = vmatprep.subr.mxu0 %v5258_v42  ;;  %v4014_v51 = vand.u32 4294901760, %v273_v16  ;;  %v5286_v42 = vand.u32 4294901760, %v5285_v8  ;;  %v4097_v6 = vand.u32 4294901760, %v263_v15 }
 0x116   : > { %1502 = vmatprep.subr.mxu1 %v5133_v53  ;;  %1355 = vmatpush2.msra.mxu0 %v5260_v49  ;;  %v4021_v53 = vand.u32 4294901760, %v271_v22  ;;  %v260_v49 = vld [vmem:[#allocation5 + $0x290] sm:$0xff] }
 0x117   : > { %1504 = vmatpush2.msra.mxu1 %v5135_v2  ;;  %1359 = vmatprep.subr.mxu0 %v5262_v57  ;;  %v5265_v2 = vld [vmem:[#allocation93_spill] sm:$0xff]  ;;  %v4042_v23 = vsub.f32 %v273_v16, %v4014_v51  ;;  %v4079_v16 = vand.u32 4294901760, %v264_v45  ;;  %v5290_v57 = vld [vmem:[#allocation80_spill] sm:$0xff]  ;;  %5291 = vst [vmem:[#allocation52_spill] sm:$0xff] %v4097_v6  ;;  %v4130_v26 = vand.u32 4294901760, %v260_v49 }
 0x118   : > { %1506 = vmatprep.subr.mxu1 %v5137_v44  ;;  %1363 = vmatpush2.msra.mxu0 %v5264_v58  ;;  %v5266_v32 = vand.u32 4294901760, %v5265_v2  ;;  %v5267_v44 = vld [vmem:[#allocation94_spill] sm:$0xff]  ;;  %v4048_v31 = vsub.f32 %v271_v22, %v4021_v53  ;;  %v4088_v22 = vand.u32 4294901760, %v262_v3  ;;  %v5292_v58 = vld [vmem:[#allocation104_spill] sm:$0xff] }
 0x119   : > { %1508 = vmatpush2.msra.mxu1 %v5138_v41  ;;  %v5268_v1 = vand.u32 4294901760, %v5267_v44  ;;  %v5269_v41 = vld [vmem:[#allocation95_spill] sm:$0xff]  ;;  %v4880_v10 = vand.u32 4294901760, %v4042_v23  ;;  %5284 = vst [vmem:[#allocation13_spill] sm:$0xff] %v4079_v16  ;;  %v5294_v2 = vld [vmem:[#allocation82_spill] sm:$0xff]  ;;  %v4114_v44 = vsub.f32 %v4037_v14, %v4879_v11  ;;  %5299 = vst [vmem:[#allocation56_spill] sm:$0xff] %v4130_v26 }
 0x11a   : > { %1367 = vmatprep.subr.mxu0 %v5266_v32  ;;  %1510 = vmatprep.subr.mxu1 %v5140_v7  ;;  %v5270_v33 = vand.u32 4294901760, %v5269_v41  ;;  %v4039_v7 = vand.u32 4294901760, %v268_v21  ;;  %v4877_v17 = vand.u32 4294901760, %v4048_v31  ;;  %5287 = vst [vmem:[#allocation48_spill] sm:$0xff] %v4088_v22 }
 0x11b   : > { %1371 = vmatpush2.msra.mxu0 %v5268_v1  ;;  %1512 = vmatpush2.msra.mxu1 %v5141_v28  ;;  %v5273_v28 = vand.u32 4294901760, %v5272_v25  ;;  %v4109_v32 = vsub.f32 %v4042_v23, %v4880_v10 }
 0x11c   : > { %1375 = vmatprep.subr.mxu0 %v5270_v33  ;;  %1514 = vmatprep.subr.mxu1 %v5142_v19  ;;  %5271 = vst [vmem:[#allocation11_spill] sm:$0xff] %v4039_v7  ;;  %v4054_v19 = vsub.f32 %v270_v48, %v4026_v30  ;;  %v4072_v9 = vsub.f32 %v268_v21, %v4039_v7  ;;  %v5288_v48 = vld [vmem:[#allocation103_spill] sm:$0xff]  ;;  %v5293_v21 = vand.u32 4294901760, %v5292_v58  ;;  %v5297_v33 = vld [vmem:[#allocation97_spill] sm:$0xff] }
 0x11d   : > { %1379 = vmatpush2.msra.mxu0 %v5273_v28  ;;  %1516 = vmatpush2.msra.mxu1 %v5143_v29  ;;  %v4063_v29 = vand.u32 4294901760, %v265_v18  ;;  %v5289_v54 = vand.u32 4294901760, %v5288_v48  ;;  %v4126_v25 = vsub.f32 %v4048_v31, %v4877_v17  ;;  %v4155_v48 = vsub.f32 %v263_v15, %v4097_v6 }
 0x11e   : > { %1383 = vmatprep.subr.mxu0 %v5275_v35  ;;  %1518 = vmatprep.subr.mxu1 %v5144_v50  ;;  %v5281_v50 = vld [vmem:[#allocation101_spill] sm:$0xff]  ;;  %v4876_v60 = vand.u32 4294901760, %v4054_v19  ;;  %v4873_v1 = vand.u32 4294901760, %v4072_v9  ;;  %v259_v35 = vld [vmem:[#allocation5 + $0x288] sm:$0xff] }
 0x11f   : > { %1387 = vmatpush2.msra.mxu0 %v5279_v0  ;;  %1520 = vmatpush2.msra.mxu1 %v5145_v12  ;;  %5280 = vst [vmem:[#allocation31_spill] sm:$0xff] %v4063_v29  ;;  %v5282_v5 = vand.u32 4294901760, %v5281_v50  ;;  %v5283_v12 = vand.u32 4294901760, %v3680_v13  ;;  %v261_v13 = vld [vmem:[#allocation5 + $0x298] sm:$0xff]  ;;  %v4101_v55 = vsub.f32 %v265_v18, %v4063_v29  ;;  %v4121_v18 = vsub.f32 %v264_v45, %v4079_v16  ;;  %v5301_v0 = vld [vmem:[#allocation99_spill] sm:$0xff] }
 0x120   : > { %1522 = vmatprep.subr.mxu1 %v5146_v61  ;;  %v4086_v61 = vsub.f32 %v266_v62, %v4058_v40  ;;  %v5295_v62 = vld [vmem:[#allocation105_spill] sm:$0xff]  ;;  %1413 = vmatprep.mubr.f32.mxu0 %v5297_v33  ;;  %v4128_v28 = vand.u32 4294901760, %v261_v13  ;;  %v4135_v50 = vsub.f32 %v262_v3, %v4088_v22  ;;  %v4140_v45 = vsub.f32 %v4054_v19, %v4876_v60 }
 0x121   : > { %1391 = vmatprep.subr.mxu0 %v5282_v5  ;;  %1524 = vmatpush2.msra.mxu1 %v5147_v46  ;;  %v4092_v46 = vsub.f32 %v267_v52, %v4056_v27  ;;  %v258_v52 = vld [vmem:[#allocation5 + $0x280] sm:$0xff]  ;;  %v5296_v41 = vand.u32 4294901760, %v5295_v62  ;;  %v4166_v58 = vand.u32 4294901760, %v259_v35  ;;  %v1682_v15 = vand.u32 4294901760, %v4126_v25  ;;  %v248_v60 = vld [vmem:[#allocation5 + $0x230] sm:$0xff] }
 0x122   : > { %1395 = vmatpush2.msra.mxu0 %v5283_v12  ;;  %1526 = vmatprep.subr.mxu1 %v5148_v47  ;;  %v4875_v47 = vand.u32 4294901760, %v4066_v4  ;;  %5298 = vst [vmem:[#allocation54_spill] sm:$0xff] %v4128_v28  ;;  %v4871_v12 = vand.u32 4294901760, %v4086_v61  ;;  %v4151_v3 = vand.u32 4294901760, %v258_v52 }
 0x123   : > { %1399 = vmatprep.subr.mxu0 %v5286_v42  ;;  %1528 = vmatpush2.msra.mxu1 %v5290_v57  ;;  %v4872_v5 = vand.u32 4294901760, %v4092_v46  ;;  %v4874_v42 = vand.u32 4294901760, %v4101_v55  ;;  %v4164_v57 = vsub.f32 %v4072_v9, %v4873_v1  ;;  %5303 = vst [vmem:[#allocation60_spill] sm:$0xff] %v4166_v58  ;;  %v4212_v1 = vsub.f32 %v259_v35, %v4166_v58 }
 0x124   : > { %1403 = vmatpush2.msra.mxu0 %v5289_v54  ;;  %1530 = vmatprep.subr.mxu1 %v5294_v2  ;;  %v4149_v8 = vsub.f32 %v4066_v4, %v4875_v47  ;;  %5302 = vst [vmem:[#allocation58_spill] sm:$0xff] %v4151_v3  ;;  %v1676_v54 = vand.u32 4294901760, %v4114_v44  ;;  %v256_v2 = vld [vmem:[#allocation5 + $0x270] sm:$0xff]  ;;  %v4176_v44 = vsub.f32 %v261_v13, %v4128_v28  ;;  %v4881_v13 = vand.u32 4294901760, %v4135_v50 }
 0x125   : > { %1407 = vmatprep.subr.mxu0 %v5293_v21  ;;  %1532 = vmatpush2.msra.mxu1 %v5300_v59  ;;  %v257_v21 = vld [vmem:[#allocation5 + $0x278] sm:$0xff]  ;;  %v4184_v62 = vsub.f32 %v4092_v46, %v4872_v5  ;;  %v4196_v25 = vsub.f32 %v258_v52, %v4151_v3  ;;  %v4201_v59 = vsub.f32 %v4101_v55, %v4874_v42  ;;  %v252_v52 = vld [vmem:[#allocation5 + $0x250] sm:$0xff] }
 0x126   : > { %1411 = vmatpush2.msra.mxu0 %v5296_v41  ;;  %1534 = vmatprep.subr.mxu1 %v3536_v43  ;;  %v1670_v43 = vand.u32 4294901760, %v4109_v32  ;;  %v4878_v32 = vand.u32 4294901760, %v4121_v18  ;;  %v254_v41 = vld [vmem:[#allocation5 + $0x260] sm:$0xff]  ;;  %v4207_v5 = vand.u32 4294901760, %v257_v21 }
 0x127   : > { %1415 = vmatmul.mubr.f32.vlgmr.msra.gmra.mxu0 %v5301_v0  ;;  %1559 = vmatprep.subr.mxu0 %v4014_v51  ;;  %5304 = vst [vmem:[#allocation62_spill] sm:$0xff] %v4196_v25  ;;  %v4221_v42 = vand.u32 4294901760, %v254_v41  ;;  %v1718_v11 = vand.u32 4294901760, %v4201_v59 }
 0x128   : > { %1536 = vmatpush2.msra.mxu1 %v3547_v37  ;;  %1561 = vmatpush1.msra.mxu0 %v4016_v63  ;;  %v4172_v37 = vsub.f32 %v260_v49, %v4130_v26  ;;  %v4189_v49 = vsub.f32 %v4086_v61, %v4871_v12  ;;  %v4882_v12 = vand.u32 4294901760, %v4155_v48  ;;  %5305 = vst [vmem:[#allocation64_spill] sm:$0xff] %v4207_v5 }
 0x129   : > { %1538 = vmatprep.subr.mxu1 %v5154_v20  ;;  %1563 = vmatprep.subr.mxu0 %v4021_v53  ;;  %v1688_v20 = vand.u32 4294901760, %v4140_v45  ;;  %v255_v45 = vld [vmem:[#allocation5 + $0x268] sm:$0xff]  ;;  %5307 = vst [vmem:[#allocation68_spill] sm:$0xff] %v4221_v42  ;;  %v4260_v10 = vsub.f32 %v254_v41, %v4221_v42 }
 0x12a   : > { %1540 = vmatpush2.msra.mxu1 %v5156_v56  ;;  %1565 = vmatpush1.msra.mxu0 %v4026_v30  ;;  %v1694_v56 = vand.u32 4294901760, %v4149_v8  ;;  %v4209_v8 = vand.u32 4294901760, %v256_v2  ;;  %v1712_v35 = vand.u32 4294901760, %v4189_v49  ;;  %v4229_v17 = vand.u32 4294901760, %v255_v45  ;;  %v250_v49 = vld [vmem:[#allocation5 + $0x240] sm:$0xff] }
 0x12b   : > { %1542 = vmatprep.subr.mxu1 %v5158_v34  ;;  %1567 = vmatprep.subr.mxu0 %v4031_v24  ;;  %v1700_v34 = vand.u32 4294901760, %v4164_v57  ;;  %v253_v57 = vld [vmem:[#allocation5 + $0x258] sm:$0xff]  ;;  %5311 = vst [vmem:[#allocation76_spill] sm:$0xff] %v4260_v10  ;;  %v4277_v41 = vand.u32 4294901760, %v250_v49 }
 0x12c   : > { %1544 = vmatpush2.msra.mxu1 %v3602_v36  ;;  %1569 = vmatpush1.msra.mxu0 %v4039_v7  ;;  %5306 = vst [vmem:[#allocation66_spill] sm:$0xff] %v4209_v8  ;;  %v4219_v36 = vsub.f32 %v4121_v18, %v4878_v32  ;;  %5308 = vst [vmem:[#allocation70_spill] sm:$0xff] %v4229_v17  ;;  %v4234_v32 = vsub.f32 %v4135_v50, %v4881_v13 }
 0x12d   : > { %1546 = vmatprep.subr.mxu1 %v3615_v39  ;;  %1571 = vmatprep.subr.mxu0 %v4056_v27  ;;  %v1706_v39 = vand.u32 4294901760, %v4184_v62  ;;  %v251_v62 = vld [vmem:[#allocation5 + $0x248] sm:$0xff]  ;;  %v4249_v13 = vsub.f32 %v256_v2, %v4209_v8  ;;  %5314 = vst [vmem:[#allocation78_spill] sm:$0xff] %v4277_v41  ;;  %v246_v27 = vld [vmem:[#allocation5 + $0x220] sm:$0xff] }
 0x12e   : > { %1548 = vmatpush2.msra.mxu1 %v3633_v38  ;;  %1550 = vmatprep.mubr.f32.mxu1 %v5297_v33  ;;  %v4242_v38 = vsub.f32 %v4155_v48, %v4882_v12  ;;  %v4244_v33 = vand.u32 4294901760, %v252_v52  ;;  %v4255_v12 = vsub.f32 %v257_v21, %v4207_v5  ;;  %v1724_v47 = vand.u32 4294901760, %v4219_v36  ;;  %v177_v21 = vld [vmem:[%s2843_s22 + $0x10] sm:$0xff] }
 0x12f   : > { %1573 = vmatpush1.msra.mxu0 %v4058_v40  ;;  %1552 = vmatmul.mubr.f32.vlgmr.msra.gmra.mxu1 %v5301_v0  ;;  %v4251_v0 = vand.u32 4294901760, %v253_v57  ;;  %v4275_v36 = vand.u32 4294901760, %v251_v62  ;;  %v4280_v40 = vsub.f32 %v255_v45, %v4229_v17  ;;  %v5317_v45 = vand.u32 4294901760, %v4212_v1 }
 0x130   : > { %5309 = vst [vmem:[#allocation72_spill] sm:$0xff] %v4244_v33  ;;  %1575 = vmatprep.subr.mxu0 %v4063_v29  ;;  %1671 = vmatprep.subr.mxu1 %v1670_v43  ;;  %v5312_v43 = vand.u32 4294901760, %v4176_v44  ;;  %v5313_v29 = vand.u32 4294901760, %v4172_v37  ;;  %v4304_v7 = vand.u32 4294901760, %v177_v21 }
 0x131   : > { %5310 = vst [vmem:[#allocation74_spill] sm:$0xff] %v4251_v0  ;;  %1577 = vmatpush1.msra.mxu0 %v4079_v16  ;;  %1677 = vmatpush1.msra.mxu1 %v1676_v54  ;;  %v1736_v54 = vand.u32 4294901760, %v4234_v32  ;;  %v249_v16 = vld [vmem:[#allocation5 + $0x238] sm:$0xff]  ;;  %5315 = vst [vmem:[#allocation88_spill] sm:$0xff] %v4280_v40 }
 0x132   : > { %v4265_v2 = vsub.f32 %v4176_v44, %v5312_v43  ;;  %v4270_v59 = vsub.f32 %v4172_v37, %v5313_v29  ;;  %1579 = vmatprep.subr.mxu0 %v4097_v6  ;;  %1683 = vmatprep.subr.mxu1 %v1682_v15  ;;  %v1730_v29 = vand.u32 4294901760, %v4242_v38  ;;  %v4285_v43 = vsub.f32 %v252_v52, %v4244_v33  ;;  %v247_v52 = vld [vmem:[#allocation5 + $0x228] sm:$0xff] }
 0x133   : > { %1581 = vmatpush1.msra.mxu0 %v4088_v22  ;;  %1689 = vmatpush1.msra.mxu1 %v1688_v20  ;;  %v5316_v15 = vand.u32 4294901760, %v4196_v25  ;;  %v4292_v6 = vand.u32 4294901760, %v248_v60  ;;  %v4298_v20 = vsub.f32 %v4212_v1, %v5317_v45  ;;  %v4302_v22 = vsub.f32 %v253_v57, %v4251_v0  ;;  %5318 = vst [vmem:[#allocation90_spill] sm:$0xff] %v4304_v7  ;;  %v244_v45 = vld [vmem:[#allocation5 + $0x210] sm:$0xff] }
 0x134   : > { %1583 = vmatprep.subr.mxu0 %v4128_v28  ;;  %1695 = vmatprep.subr.mxu1 %v1694_v56  ;;  %v1748_v56 = vand.u32 4294901760, %v4270_v59  ;;  %v4309_v28 = vand.u32 4294901760, %v249_v16  ;;  %v4314_v38 = vsub.f32 %v250_v49, %v4277_v41  ;;  %v5321_v49 = vand.u32 4294901760, %v4249_v13 }
 0x135   : > { %v4290_v32 = vsub.f32 %v4196_v25, %v5316_v15  ;;  %1585 = vmatpush1.msra.mxu0 %v4130_v26  ;;  %1701 = vmatpush1.msra.mxu1 %v1700_v34  ;;  %v1742_v15 = vand.u32 4294901760, %v4265_v2  ;;  %v4317_v25 = vand.u32 4294901760, %v246_v27  ;;  %v245_v26 = vld [vmem:[#allocation5 + $0x218] sm:$0xff]  ;;  %v4320_v34 = vsub.f32 %v251_v62, %v4275_v36 }
 0x136   : > { %1587 = vmatprep.subr.mxu0 %v4166_v58  ;;  %1707 = vmatprep.subr.mxu1 %v1706_v39  ;;  %5319 = vst [vmem:[#allocation92_spill] sm:$0xff] %v4314_v38  ;;  %v4325_v2 = vsub.f32 %v248_v60, %v4292_v6  ;;  %v4327_v39 = vand.u32 4294901760, %v247_v52  ;;  %v1754_v57 = vand.u32 4294901760, %v4298_v20  ;;  %v5320_v62 = vand.u32 4294901760, %v4255_v12  ;;  %v242_v58 = vld [vmem:[#allocation5 + $0x200] sm:$0xff] }
 0x137   : > { %1589 = vmatpush1.msra.mxu0 %v4151_v3  ;;  %1713 = vmatpush1.msra.mxu1 %v1712_v35  ;;  %v1760_v59 = vand.u32 4294901760, %v4290_v32  ;;  %v243_v32 = vld [vmem:[#allocation5 + $0x208] sm:$0xff]  ;;  %v4337_v60 = vsub.f32 %v177_v21, %v4304_v7  ;;  %v5322_v21 = vand.u32 4294901760, %v4280_v40 }
 0x138   : > { %1591 = vmatprep.subr.mxu0 %v4207_v5  ;;  %1719 = vmatprep.subr.mxu1 %v1718_v11  ;;  %v1765_v3 = vsub.f32 %v4255_v12, %v5320_v62  ;;  %v1771_v11 = vsub.f32 %v4249_v13, %v5321_v49  ;;  %v4343_v5 = vand.u32 4294901760, %v245_v26  ;;  %v4347_v62 = vsub.f32 %v249_v16, %v4309_v28 }
 0x139   : > { %1593 = vmatpush1.msra.mxu0 %v4209_v8  ;;  %1725 = vmatpush1.msra.mxu1 %v1724_v47  ;;  %v1777_v35 = vsub.f32 %v4280_v40, %v5322_v21  ;;  %v4354_v47 = vsub.f32 %v246_v27, %v4317_v25  ;;  %v4356_v8 = vand.u32 4294901760, %v244_v45  ;;  %v5323_v16 = vand.u32 4294901760, %v4260_v10 }
 0x13a   : > { %1595 = vmatprep.subr.mxu0 %v4229_v17  ;;  %1731 = vmatprep.subr.mxu1 %v1730_v29  ;;  %v4363_v17 = vand.u32 4294901760, %v243_v32  ;;  %v4365_v29 = vand.u32 4294901760, %v242_v58  ;;  %v4368_v21 = vsub.f32 %v247_v52, %v4327_v39  ;;  %v1766_v27 = vand.u32 4294901760, %v1765_v3 }
 0x13b   : > { %1597 = vmatpush1.msra.mxu0 %v4221_v42  ;;  %1737 = vmatpush1.msra.mxu1 %v1736_v54  ;;  %v1783_v20 = vsub.f32 %v4260_v10, %v5323_v16  ;;  %v5325_v49 = vand.u32 4294901760, %v4302_v22  ;;  %v4921_v54 = vand.u32 4294901760, %v4314_v38  ;;  %v1772_v16 = vand.u32 4294901760, %v1771_v11 }
 0x13c   : > { %5324 = vst [vmem:[#allocation33_spill] sm:$0xff] %v4368_v21  ;;  %1599 = vmatprep.subr.mxu0 %v4251_v0  ;;  %1743 = vmatprep.subr.mxu1 %v1742_v15  ;;  %v5326_v10 = vand.u32 4294901760, %v4285_v43  ;;  %v4382_v3 = vsub.f32 %v245_v26, %v4343_v5  ;;  %v1778_v15 = vand.u32 4294901760, %v1777_v35  ;;  %v5327_v40 = vand.u32 4294901760, %v4320_v34 }
 0x13d   : > { %v1789_v42 = vsub.f32 %v4302_v22, %v5325_v49  ;;  %1601 = vmatpush1.msra.mxu0 %v4244_v33  ;;  %1749 = vmatpush1.msra.mxu1 %v1748_v56  ;;  %v4386_v49 = vsub.f32 %v244_v45, %v4356_v8  ;;  %v4922_v11 = vand.u32 4294901760, %v4325_v2  ;;  %v4394_v26 = vsub.f32 %v242_v58, %v4365_v29 }
 0x13e   : > { %v1795_v52 = vsub.f32 %v4285_v43, %v5326_v10  ;;  %1603 = vmatprep.subr.mxu0 %v4275_v36  ;;  %1755 = vmatprep.subr.mxu1 %v1754_v57  ;;  %v1801_v56 = vsub.f32 %v4320_v34, %v5327_v40  ;;  %v1784_v10 = vand.u32 4294901760, %v1783_v20  ;;  %v4398_v57 = vsub.f32 %v243_v32, %v4363_v17 }
 0x13f   : > { %1605 = vmatpush1.msra.mxu0 %v4277_v41  ;;  %1761 = vmatpush1.msra.mxu1 %v1760_v59  ;;  %5328 = vst [vmem:[#allocation14_spill] sm:$0xff] %v4394_v26  ;;  %v1790_v45 = vand.u32 4294901760, %v1789_v42  ;;  %v1807_v40 = vsub.f32 %v4314_v38, %v4921_v54  ;;  %v5329_v35 = vand.u32 4294901760, %v4337_v60  ;;  %v4923_v58 = vand.u32 4294901760, %v4354_v47 }
 0x140   : > { %1607 = vmatprep.subr.mxu0 %v4309_v28  ;;  %1767 = vmatprep.subr.mxu1 %v1766_v27  ;;  %v1796_v20 = vand.u32 4294901760, %v1795_v52  ;;  %v5330_v32 = vand.u32 4294901760, %v4347_v62  ;;  %v4924_v42 = vand.u32 4294901760, %v4382_v3  ;;  %v1802_v27 = vand.u32 4294901760, %v1801_v56 }
 0x141   : > { %v1658_v59 = vsub.f32 %v4337_v60, %v5329_v35  ;;  %1609 = vmatpush1.msra.mxu0 %v4292_v6  ;;  %1773 = vmatpush1.msra.mxu1 %v1772_v16  ;;  %v1819_v35 = vsub.f32 %v4325_v2, %v4922_v11  ;;  %v5331_v16 = vand.u32 4294901760, %v4368_v21  ;;  %v1831_v11 = vsub.f32 %v4354_v47, %v4923_v58 }
 0x142   : > { %v1813_v0 = vsub.f32 %v4347_v62, %v5330_v32  ;;  %1611 = vmatprep.subr.mxu0 %v4327_v39  ;;  %1779 = vmatprep.subr.mxu1 %v1778_v15  ;;  %v4925_v32 = vand.u32 4294901760, %v4398_v57  ;;  %v1808_v15 = vand.u32 4294901760, %v1807_v40  ;;  %v5332_v40 = vand.u32 4294901760, %v4386_v49 }
 0x143   : > { %1613 = vmatpush1.msra.mxu0 %v4317_v25  ;;  %1785 = vmatpush1.msra.mxu1 %v1784_v10  ;;  %v1825_v52 = vsub.f32 %v4368_v21, %v5331_v16  ;;  %v1659_v56 = vand.u32 4294901760, %v1658_v59  ;;  %v1837_v16 = vsub.f32 %v4382_v3, %v4924_v42  ;;  %v4926_v58 = vmov 0.0  }
 0x144   : > { %1615 = vmatprep.subr.mxu0 %v4343_v5  ;;  %1791 = vmatprep.subr.mxu1 %v1790_v45  ;;  %v1814_v10 = vand.u32 4294901760, %v1813_v0  ;;  %v1820_v45 = vand.u32 4294901760, %v1819_v35  ;;  %v1843_v59 = vsub.f32 %v4386_v49, %v5332_v40  ;;  %v1849_v0 = vsub.f32 %v4398_v57, %v4925_v32  ;;  %v5349_v32 = vld [vmem:[#allocation66_spill] sm:$0xff] }
 0x145   : > { %1617 = vmatpush1.msra.mxu0 %v4356_v8  ;;  %1797 = vmatpush1.msra.mxu1 %v1796_v20  ;;  %v1826_v54 = vand.u32 4294901760, %v1825_v52  ;;  %v1832_v20 = vand.u32 4294901760, %v1831_v11  ;;  %v1838_v40 = vand.u32 4294901760, %v1837_v16  ;;  %v5339_v16 = vld [vmem:[#allocation13_spill] sm:$0xff] }
 0x146   : > { %1619 = vmatprep.subr.mxu0 %v4363_v17  ;;  %1803 = vmatprep.subr.mxu1 %v1802_v27  ;;  %v5333_v27 = vand.u32 4294901760, %v4394_v26  ;;  %v1844_v42 = vand.u32 4294901760, %v1843_v59  ;;  %v1850_v52 = vand.u32 4294901760, %v1849_v0  ;;  %v5341_v59 = vld [vmem:[#allocation52_spill] sm:$0xff] }
 0x147   : > { %1621 = vmatpush1.msra.mxu0 %v4365_v29  ;;  %1654 = vmatprep.mubr.f32.mxu0 %v4926_v58  ;;  %v5342_v0 = vld [vmem:[#allocation76_spill] sm:$0xff] }
 0x148   : > { %1809 = vmatpush1.msra.mxu1 %v1808_v15  ;;  %1660 = vmatmul.mubr.f32.vlgmr.msra.gmra.mxu0 %v1659_v56  ;;  %v1855_v35 = vsub.f32 %v4394_v26, %v5333_v27  ;;  %v5336_v15 = vld [vmem:[#allocation62_spill] sm:$0xff]  ;;  %v5337_v56 = vld [vmem:[#allocation12_spill] sm:$0xff] }
 0x149   : > { %1815 = vmatprep.subr.mxu1 %v1814_v10  ;;  %1900 = vmatprep.subr.mxu0 %v4042_v23  ;;  %v5338_v10 = vld [vmem:[#allocation31_spill] sm:$0xff]  ;;  %v5344_v27 = vld [vmem:[#allocation54_spill] sm:$0xff] }
 0x14a   : > { %1821 = vmatpush1.msra.mxu1 %v1820_v45  ;;  %1903 = vmatpush1.msra.mxu0 %v4037_v14  ;;  %v1856_v11 = vand.u32 4294901760, %v1855_v35  ;;  %v5340_v45 = vld [vmem:[#allocation88_spill] sm:$0xff] }
 0x14b   : > { %1827 = vmatprep.subr.mxu1 %v1826_v54  ;;  %1906 = vmatprep.subr.mxu0 %v4048_v31  ;;  %v5334_v54 = vld [vmem:[#allocation11_spill] sm:$0xff]  ;;  %v5345_v35 = vld [vmem:[#allocation56_spill] sm:$0xff] }
 0x14c   : > { %1833 = vmatpush1.msra.mxu1 %v1832_v20  ;;  %1909 = vmatpush1.msra.mxu0 %v4054_v19  ;;  %v5343_v20 = vld [vmem:[#allocation48_spill] sm:$0xff] }
 0x14d   : > { %1839 = vmatprep.subr.mxu1 %v1838_v40  ;;  %1912 = vmatprep.subr.mxu0 %v4066_v4  ;;  %v5346_v40 = vld [vmem:[#allocation60_spill] sm:$0xff] }
 0x14e   : > { %1845 = vmatpush1.msra.mxu1 %v1844_v42  ;;  %1915 = vmatpush1.msra.mxu0 %v4072_v9  ;;  %v5335_v42 = vld [vmem:[#allocation29_spill] sm:$0xff] }
 0x14f   : > { %1851 = vmatprep.subr.mxu1 %v1850_v52  ;;  %1918 = vmatprep.subr.mxu0 %v4092_v46  ;;  %v5347_v52 = vld [vmem:[#allocation58_spill] sm:$0xff] }
 0x150   : > { %1857 = vmatpush1.msra.mxu1 %v1856_v11  ;;  %1890 = vmatprep.mubr.f32.mxu1 %v4926_v58  ;;  %v5348_v11 = vld [vmem:[#allocation64_spill] sm:$0xff]  ;;  %v5350_v58 = vld [vmem:[#allocation70_spill] sm:$0xff] }
 0x151   : > { %1921 = vmatpush1.msra.mxu0 %v4086_v61  ;;  %1892 = vmatmul.mubr.f32.vlgmr.msra.gmra.mxu1 %v4304_v7  ;;  %v5351_v7 = vld [vmem:[#allocation68_spill] sm:$0xff] }
 0x152   : > { %1924 = vmatprep.subr.mxu0 %v4101_v55  ;;  %2036 = vmatprep.subr.mxu1 %v4014_v51 }
 0x153   : > { %1927 = vmatpush1.msra.mxu0 %v4121_v18  ;;  %2038 = vmatpush1.msra.mxu1 %v4016_v63 }
 0x154   : > { %1930 = vmatprep.subr.mxu0 %v4155_v48  ;;  %2040 = vmatprep.subr.mxu1 %v4021_v53 }
 0x155   : > { %1933 = vmatpush1.msra.mxu0 %v4135_v50  ;;  %2042 = vmatpush1.msra.mxu1 %v4026_v30 }
 0x156   : > { %1936 = vmatprep.subr.mxu0 %v4176_v44  ;;  %2044 = vmatprep.subr.mxu1 %v4031_v24 }
 0x157   : > { %1939 = vmatpush1.msra.mxu0 %v4172_v37  ;;  %2046 = vmatpush1.msra.mxu1 %v5334_v54 }
 0x158   : > { %1942 = vmatprep.subr.mxu0 %v4212_v1  ;;  %2048 = vmatprep.subr.mxu1 %v5335_v42 }
 0x159   : > { %1945 = vmatpush1.msra.mxu0 %v5336_v15  ;;  %2050 = vmatpush1.msra.mxu1 %v5337_v56 }
 0x15a   : > { %1948 = vmatprep.subr.mxu0 %v4255_v12  ;;  %2052 = vmatprep.subr.mxu1 %v5338_v10 }
 0x15b   : > { %1951 = vmatpush1.msra.mxu0 %v4249_v13  ;;  %2054 = vmatpush1.msra.mxu1 %v5339_v16 }
 0x15c   : > { %1954 = vmatprep.subr.mxu0 %v5340_v45  ;;  %2056 = vmatprep.subr.mxu1 %v5341_v59 }
 0x15d   : > { %1957 = vmatpush1.msra.mxu0 %v5342_v0  ;;  %2058 = vmatpush1.msra.mxu1 %v5343_v20 }
 0x15e   : > { %1960 = vmatprep.subr.mxu0 %v4302_v22  ;;  %2060 = vmatprep.subr.mxu1 %v5344_v27 }
 0x15f   : > { %1963 = vmatpush1.msra.mxu0 %v4285_v43  ;;  %2062 = vmatpush1.msra.mxu1 %v5345_v35 }
 0x160   : > { %1966 = vmatprep.subr.mxu0 %v4320_v34  ;;  %2064 = vmatprep.subr.mxu1 %v5346_v40 }
 0x161   : > { %1969 = vmatpush1.msra.mxu0 %v4314_v38  ;;  %2066 = vmatpush1.msra.mxu1 %v5347_v52  ;;  %v5352_v38 = vld [vmem:[#allocation74_spill] sm:$0xff] }
 0x162   : > { %1972 = vmatprep.subr.mxu0 %v4347_v62  ;;  %2068 = vmatprep.subr.mxu1 %v5348_v11 }
 0x163   : > { %1975 = vmatpush1.msra.mxu0 %v4325_v2  ;;  %2070 = vmatpush1.msra.mxu1 %v5349_v32 }
 0x164   : > { %1978 = vmatprep.subr.mxu0 %v4368_v21  ;;  %2072 = vmatprep.subr.mxu1 %v5350_v58  ;;  %v5353_v21 = vmov 0.0  }
 0x165   : > { %1981 = vmatpush1.msra.mxu0 %v4354_v47  ;;  %2074 = vmatpush1.msra.mxu1 %v5351_v7 }
 0x166   : > { %1984 = vmatprep.subr.mxu0 %v4382_v3  ;;  %2076 = vmatprep.subr.mxu1 %v5352_v38  ;;  %v5354_v38 = vand.u32 4294901760, %v4042_v23  ;;  %v5358_v23 = vand.u32 4294901760, %v4066_v4  ;;  %v5362_v4 = vand.u32 4294901760, %v4337_v60 }
 0x167   : > { %1987 = vmatpush1.msra.mxu0 %v4386_v49  ;;  %2078 = vmatpush1.msra.mxu1 %v4244_v33  ;;  %v5355_v33 = vand.u32 4294901760, %v4037_v14  ;;  %v5359_v14 = vand.u32 4294901760, %v4072_v9  ;;  %v5364_v9 = vand.u32 4294901760, %v4121_v18  ;;  %v5374_v18 = vand.u32 4294901760, %v5342_v0 }
 0x168   : > { %1990 = vmatprep.subr.mxu0 %v4398_v57  ;;  %2080 = vmatprep.subr.mxu1 %v4275_v36 }
 0x169   : > { %1993 = vmatpush1.msra.mxu0 %v4394_v26  ;;  %2026 = vmatprep.mubr.f32.mxu0 %v5353_v21  ;;  %v5356_v26 = vand.u32 4294901760, %v4048_v31  ;;  %v5360_v31 = vand.u32 4294901760, %v4092_v46  ;;  %v5365_v46 = vand.u32 4294901760, %v4155_v48  ;;  %v5377_v48 = vand.u32 4294901760, %v4320_v34 }
 0x16a   : > { %2082 = vmatpush1.msra.mxu1 %v4277_v41  ;;  %2029 = vmatmul.mubr.f32.vlgmr.msra.gmra.mxu0 %v4337_v60  ;;  %v5357_v41 = vand.u32 4294901760, %v4054_v19  ;;  %v5361_v19 = vand.u32 4294901760, %v4086_v61  ;;  %v5366_v61 = vand.u32 4294901760, %v4135_v50  ;;  %v5375_v50 = vand.u32 4294901760, %v4302_v22  ;;  %v5386_v60 = vld [vmem:[#allocation74_spill] sm:$0xff] }
 0x16b   : > { %2084 = vmatprep.subr.mxu1 %v4309_v28  ;;  %2144 = vmatprep.subr.mxu0 %v5354_v38  ;;  %v5380_v22 = vand.u32 4294901760, %v4347_v62  ;;  %v5384_v38 = vand.u32 4294901760, %v4354_v47  ;;  %v5385_v34 = vand.u32 4294901760, %v4382_v3  ;;  %v5388_v62 = vld [vmem:[#allocation72_spill] sm:$0xff]  ;;  %v5393_v3 = vld [vmem:[#allocation90_spill] sm:$0xff] }
 0x16c   : > { %2086 = vmatpush1.msra.mxu1 %v4292_v6  ;;  %2148 = vmatpush1.msra.mxu0 %v5355_v33  ;;  %v5363_v33 = vand.u32 4294901760, %v4101_v55  ;;  %v5367_v55 = vand.u32 4294901760, %v4176_v44 }
 0x16d   : > { %2088 = vmatprep.subr.mxu1 %v4327_v39  ;;  %2152 = vmatprep.subr.mxu0 %v5356_v26  ;;  %v5389_v26 = vand.u32 4294901760, %v4398_v57 }
 0x16e   : > { %2090 = vmatpush1.msra.mxu1 %v4317_v25  ;;  %2156 = vmatpush1.msra.mxu0 %v5357_v41  ;;  %v5382_v41 = vld [vmem:[#allocation33_spill] sm:$0xff] }
 0x16f   : > { %2092 = vmatprep.subr.mxu1 %v4343_v5  ;;  %2160 = vmatprep.subr.mxu0 %v5358_v23 }
 0x170   : > { %2094 = vmatpush1.msra.mxu1 %v4356_v8  ;;  %2164 = vmatpush1.msra.mxu0 %v5359_v14 }
 0x171   : > { %2096 = vmatprep.subr.mxu1 %v4363_v17  ;;  %2168 = vmatprep.subr.mxu0 %v5360_v31 }
 0x172   : > { %2098 = vmatpush1.msra.mxu1 %v4365_v29  ;;  %2131 = vmatprep.mubr.f32.mxu1 %v5353_v21 }
 0x173   : > { %2172 = vmatpush1.msra.mxu0 %v5361_v19  ;;  %2135 = vmatmul.mubr.f32.vlgmr.msra.gmra.mxu1 %v5362_v4 }
 0x174   : > { %2176 = vmatprep.subr.mxu0 %v5363_v33  ;;  %2310 = vmatprep.subr.mxu1 %v4014_v51  ;;  %v5368_v51 = vand.u32 4294901760, %v4172_v37  ;;  %v5378_v37 = vld [vmem:[#allocation92_spill] sm:$0xff] }
 0x175   : > { %2180 = vmatpush1.msra.mxu0 %v5364_v9  ;;  %2312 = vmatpush1.msra.mxu1 %v4016_v63  ;;  %v5369_v63 = vand.u32 4294901760, %v4212_v1  ;;  %v5373_v1 = vand.u32 4294901760, %v5340_v45  ;;  %v5379_v44 = vand.u32 4294901760, %v5378_v37 }
 0x176   : > { %2184 = vmatprep.subr.mxu0 %v5365_v46  ;;  %2314 = vmatprep.subr.mxu1 %v4021_v53  ;;  %v5370_v53 = vand.u32 4294901760, %v5336_v15 }
 0x177   : > { %2188 = vmatpush1.msra.mxu0 %v5366_v61  ;;  %2316 = vmatpush1.msra.mxu1 %v4026_v30  ;;  %v5371_v30 = vand.u32 4294901760, %v4255_v12  ;;  %v5376_v12 = vand.u32 4294901760, %v4285_v43  ;;  %v5383_v43 = vand.u32 4294901760, %v5382_v41 }
 0x178   : > { %2192 = vmatprep.subr.mxu0 %v5367_v55  ;;  %2318 = vmatprep.subr.mxu1 %v4031_v24  ;;  %v5372_v24 = vand.u32 4294901760, %v4249_v13  ;;  %v5381_v13 = vand.u32 4294901760, %v4325_v2  ;;  %v5387_v2 = vand.u32 4294901760, %v4386_v49  ;;  %v807_v49 = vpop.f32.mrf.mxu1 }
 0x179   : > { %2196 = vmatpush1.msra.mxu0 %v5368_v51  ;;  %2320 = vmatpush1.msra.mxu1 %v5334_v54 }
 0x17a   : > { %2200 = vmatprep.subr.mxu0 %v5369_v63  ;;  %2322 = vmatprep.subr.mxu1 %v5335_v42  ;;  %v809_v57 = vpop.f32.mrf.mxu1 }
 0x17b   : > { %2204 = vmatpush1.msra.mxu0 %v5370_v53  ;;  %2324 = vmatpush1.msra.mxu1 %v5337_v56 }
 0x17c   : > { %2208 = vmatprep.subr.mxu0 %v5371_v30  ;;  %2326 = vmatprep.subr.mxu1 %v5338_v10 }
 0x17d   : > { %2212 = vmatpush1.msra.mxu0 %v5372_v24  ;;  %2328 = vmatpush1.msra.mxu1 %v5339_v16 }
 0x17e   : > { %2216 = vmatprep.subr.mxu0 %v5373_v1  ;;  %2330 = vmatprep.subr.mxu1 %v5341_v59 }
 0x17f   : > { %2220 = vmatpush1.msra.mxu0 %v5374_v18  ;;  %2332 = vmatpush1.msra.mxu1 %v5343_v20 }
 0x180   : > { %2224 = vmatprep.subr.mxu0 %v5375_v50  ;;  %2334 = vmatprep.subr.mxu1 %v5344_v27 }
 0x181   : > { %2228 = vmatpush1.msra.mxu0 %v5376_v12  ;;  %2336 = vmatpush1.msra.mxu1 %v5345_v35 }
 0x182   : > { %2232 = vmatprep.subr.mxu0 %v5377_v48  ;;  %2338 = vmatprep.subr.mxu1 %v5346_v40 }
 0x183   : > { %2236 = vmatpush1.msra.mxu0 %v5379_v44  ;;  %2340 = vmatpush1.msra.mxu1 %v5347_v52 }
 0x184   : > { %2240 = vmatprep.subr.mxu0 %v5380_v22  ;;  %2342 = vmatprep.subr.mxu1 %v5348_v11 }
 0x185   : > { %2244 = vmatpush1.msra.mxu0 %v5381_v13  ;;  %2344 = vmatpush1.msra.mxu1 %v5349_v32 }
 0x186   : > { %2248 = vmatprep.subr.mxu0 %v5383_v43  ;;  %2346 = vmatprep.subr.mxu1 %v5350_v58  ;;  %v5390_v58 = vld [vmem:[#allocation14_spill] sm:$0xff] }
 0x187   : > { %2252 = vmatpush1.msra.mxu0 %v5384_v38  ;;  %2348 = vmatpush1.msra.mxu1 %v5351_v7  ;;  %v5391_v47 = vand.u32 4294901760, %v5390_v58  ;;  %v5392_v7 = vld [vmem:[#allocation78_spill] sm:$0xff] }
 0x188   : > { %2256 = vmatprep.subr.mxu0 %v5385_v34  ;;  %2350 = vmatprep.subr.mxu1 %v5386_v60 }
 0x189   : > { %2260 = vmatpush1.msra.mxu0 %v5387_v2  ;;  %2352 = vmatpush1.msra.mxu1 %v5388_v62 }
 0x18a   : > { %2264 = vmatprep.subr.mxu0 %v5389_v26  ;;  %2354 = vmatprep.subr.mxu1 %v4275_v36  ;;  %v414_v36 = vpop.f32.mrf.mxu0 }
 0x18b   : > { %2268 = vmatpush1.msra.mxu0 %v5391_v47  ;;  %2301 = vmatprep.mubr.f32.mxu0 %v5353_v21 }
 0x18c   : > { %2356 = vmatpush1.msra.mxu1 %v5392_v7  ;;  %2303 = vmatmul.mubr.f32.vlgmr.msra.gmra.mxu0 %v5393_v3 }
 0x18d   : > { %2358 = vmatprep.subr.mxu1 %v4309_v28  ;;  %2405 = vmatprep.mubr.f32.mxu1 %v5353_v21  ;;  %v416_v28 = vpop.f32.mrf.mxu0 }
 0x18e   : > { %2360 = vmatpush1.msra.mxu1 %v4292_v6 }
 0x18f   : > { %2362 = vmatprep.subr.mxu1 %v4327_v39 }
 0x190   : > { %2364 = vmatpush1.msra.mxu1 %v4317_v25 }
 0x191   : > { %2366 = vmatprep.subr.mxu1 %v4343_v5  ;;  %v808_v5 = vadd.f32 %v807_v49, %v414_v36 }
 0x192   : > { %2368 = vmatpush1.msra.mxu1 %v4356_v8  ;;  %v810_v8 = vadd.f32 %v809_v57, %v416_v28 }
 0x193   : > { %2370 = vmatprep.subr.mxu1 %v4363_v17 }
 0x194   : > { %2372 = vmatpush1.msra.mxu1 %v4365_v29 }
 0x195   : > { %2407 = vmatmul.mubr.f32.vlgmr.msra.gmra.mxu1 %v5393_v3 }
 0x1a4   : > { %v1010_v21 = vpop.f32.mrf.mxu0 }
 0x1a5   : > { %v1011_v56 = vadd.f32 %v1010_v21, %v808_v5 }
 0x1a6   : > { %v1012_v6 = vpop.f32.mrf.mxu0 }
 0x1a7   : > { %v1013_v10 = vadd.f32 %v1012_v6, %v810_v8 }
 0x1ad   : > { %v1151_v32 = vpop.f32.mrf.mxu1 }
 0x1ae   : > { %v1152_v29 = vadd.f32 %v1151_v32, %v1011_v56 }
 0x1af   : > { %v1153_v54 = vpop.f32.mrf.mxu1 }
 0x1b0   : > { %v1154_v59 = vadd.f32 %v1153_v54, %v1013_v10 }
 0x1e7   : > { %v1416_v39 = vpop.f32.mrf.mxu0 }
 0x1e8   : > { %v1417_v0 = vadd.f32 %v1416_v39, %v1152_v29 }
 0x1e9   : > { %v1418_v25 = vpop.f32.mrf.mxu0 }
 0x1ea   : > { %v1419_v27 = vadd.f32 %v1418_v25, %v1154_v59 }
 0x1ef   : > { %v1553_v42 = vpop.f32.mrf.mxu1 }
 0x1f0   : > { %v1554_v35 = vadd.f32 %v1553_v42, %v1417_v0 }
 0x1f1   : > { %v1555_v17 = vpop.f32.mrf.mxu1 }
 0x1f2   : > { %v1556_v52 = vadd.f32 %v1555_v17, %v1419_v27 }
 0x208   : > { %v1661_v15 = vpop.f32.mrf.mxu0 }
 0x209   : > { %v1662_v11 = vadd.f32 %v1661_v15, %v1554_v35 }
 0x20a   : > { %v1663_v16 = vpop.f32.mrf.mxu0 }
 0x20b   : > { %v1664_v31 = vadd.f32 %v1663_v16, %v1556_v52 }
 0x211   : > { %v1893_v45 = vpop.f32.mrf.mxu1 }
 0x212   : > { %v1894_v19 = vadd.f32 %v1893_v45, %v1662_v11 }
 0x213   : > { %v1895_v40 = vpop.f32.mrf.mxu1 }
 0x214   : > { %v1896_v33 = vadd.f32 %v1895_v40, %v1664_v31 }
 0x22a   : > { %v2030_v20 = vpop.f32.mrf.mxu0 }
 0x22b   : > { %v2031_v9 = vadd.f32 %v2030_v20, %v1894_v19 }
 0x22c   : > { %v2032_v23 = vpop.f32.mrf.mxu0 }
 0x22d   : > { %v2033_v61 = vadd.f32 %v2032_v23, %v1896_v33 }
 0x233   : > { %v2136_v14 = vpop.f32.mrf.mxu1 }
 0x234   : > { %v2137_v55 = vadd.f32 %v2136_v14, %v2031_v9 }
 0x235   : > { %v2138_v46 = vpop.f32.mrf.mxu1 }
 0x236   : > { %v2139_v63 = vadd.f32 %v2138_v46, %v2033_v61 }
 0x24c   : > { %v2304_v4 = vpop.f32.mrf.mxu0 }
 0x24d   : > { %v2305_v53 = vadd.f32 %v2304_v4, %v2137_v55 }
 0x24e   : > { %v2306_v51 = vpop.f32.mrf.mxu0 }
 0x24f   : > { %v2307_v24 = vadd.f32 %v2306_v51, %v2139_v63 }
 0x255   : > { %v2408_v30 = vpop.f32.mrf.mxu1 }
 0x256   : > { %v2409_v1 = vadd.f32 %v2408_v30, %v2305_v53 }
 0x257   : > { %v2410_v18 = vpop.f32.mrf.mxu1 }
 0x258   : > { %2413 = vst [vmem:[%s174_s6] sm:$0xff] %v2409_v1  ;;  %v2411_v50 = vadd.f32 %v2410_v18, %v2307_v24 }
 0x25a   : > { %2414 = vst [vmem:[%s174_s6 + $0x8] sm:$0xff] %v2411_v50 }
 0x25b   : > { %2654 = shalt.err (!%p2651_p0)
}
 0x25c   : > { %s2655_s28 = scalar_lea.hbm %s2428_s23, 256  ;;  %s2659_s5 = scalar_lea.hbm %s4653_s2, 512 }
 0x25d   : > { %p2656_p11 = scmp.ne.s32.totalorder %s2428_s23, %s2655_s28  ;;  %p2660_p1 = scmp.lt.s32.totalorder %s2428_s23, %s4653_s2 }
 0x25e   : > { %p2661_p4 = scmp.lt.s32.totalorder %s2659_s5, %s2655_s28 }
 0x25f   : > { %p2657_p9 = pnand %p2656_p11, %p5394_p3 }
 0x260   : > { %p2662_p6 = por %p2661_p4, %p2660_p1 }
 0x261   : > { %p2658_p12 = pneg %p2657_p9 }
 0x263   : > { %p2663_p8 = pnand %p2662_p6, %p2658_p12 }
 0x265   : > { %2666 = shalt.err (!%p2663_p8)
}
 0x266   : > { %2533 = dma.vmem_to_hbm [thread:$0]  (%p5394_p3), %s2431_s14, 256, %s2428_s23, %s2416_s24  }
 0x267 PF: > { %s2442_s18 = sand.u32 1, %s2697_s9   ;;  %p5395_p5 = scmp.ne.s32.totalorder %s4936_s16, 0 }
 0x268   : > { %p5396_p7 = scmp.ge.s32.totalorder %s2709_s12, 2  ;;  %s2443_s22 = scalar_lea.sflag [#allocation4], %s2442_s18 }
 0x26a   : > { %p2544_p10 = pnand %p5396_p7, %p5395_p5 }
 0x26c   : > { %p2545_p2 = pneg %p2544_p10 }
 0x26e   : > { %2692 = dma.done.wait (%p2545_p2), %s2443_s22, 256  }
 0x26f   : > { %2694 = vsyncadd (%p2545_p2), %s2443_s22, 4294967040  ;;  %p16_p13 = scmp.ge.s32.totalorder %s2786_s21, 4   ;;  %s5397_s9 = smov %s2701_s10 }
 0x270   : > { %s5398_s10 = smov %s2705_s11  ;;  %s5399_s11 = smov %s2803_s29 }
 0x271   : > { %s5400_s12 = smov %s2786_s21  ;;  %18 = sbr.rel (!%p16_p13) target bundleno = 6 (0x6), region = 77 }
 0x276   :  { %2448 = vsyncpa [#allocation3], 1 }
 0x277   :  { %2450 = vsyncpa [#allocation3 + $0x1], 1 }
 0x278   :  { %2451 = vsyncpa [#allocation6], 1 }
 0x279   :  { %2452 = vsyncpa [#allocation4], 1 }
 0x27a   :  { %2454 = vsyncpa [#allocation4 + $0x1], 1 }

</bundles_post_ra>
